<compile_context>
chip_gen: v6e
topology: v6e:2x2x1
jax: 0.10.0
libtpu: 0.0.40
codegen_flags: <defaults>
</compile_context>

<pallas_src>
import functools

import numpy as np
import jax
import jax.numpy as jnp
from jax import lax
from jax.experimental import pallas as pl
from jax.experimental.pallas import tpu as pltpu


# ----------------------------------------------------------------------------
# Model config: FeatureExtractor(obs_dim=(4,16,16), in_channels=4,
# out_channels=[8,16], kernel_sizes=3, strides=2, padding=1, features_out=32)
# ----------------------------------------------------------------------------
CONV_CFG = [  # (in_c, out_c, kernel, stride, padding)
    (4, 8, 3, 2, 1),
    (8, 16, 3, 2, 1),
]
IMG_HW = (16, 16)
FEATURES_OUT = 32


def _conv_out_hw(hw, k, s, p):
    return tuple((d + 2 * p - k) // s + 1 for d in hw)


def _round_up(x, m):
    return ((x + m - 1) // m) * m


# ----------------------------------------------------------------------------
# Parameters (PyTorch layout, deterministic) + one-time Pallas weight prep.
# ----------------------------------------------------------------------------
def init_params(key):
    """Raw parameters in PyTorch layout (Conv2d OIHW, Linear (out, in))."""
    params = {"convs": [], "fc": None}
    hw = IMG_HW
    for (ic, oc, k, s, p) in CONV_CFG:
        key, k1, k2 = jax.random.split(key, 3)
        w = 0.1 * jax.random.normal(k1, (oc, ic, k, k), jnp.float32)
        b = 0.1 * jax.random.normal(k2, (oc,), jnp.float32)
        params["convs"].append((w, b, s, p))
        hw = _conv_out_hw(hw, k, s, p)
    flat_dim = CONV_CFG[-1][1] * hw[0] * hw[1]          # C*H*W (torch flatten order)
    key, k1, k2 = jax.random.split(key, 3)
    w_fc = 0.1 * jax.random.normal(k1, (FEATURES_OUT, flat_dim), jnp.float32)
    b_fc = 0.1 * jax.random.normal(k2, (FEATURES_OUT,), jnp.float32)
    params["fc"] = (w_fc, b_fc)
    return params


def _conv_as_matrix(w_oihw, b, H, W, stride, pad):
    """Dense matrix / bias-row of a Conv2d as a linear map on CHW-flattened tensors.

    Returns M:(IC*H*W, OC*OH*OW), b_row:(1, OC*OH*OW) such that
        flatten_CHW(conv2d(x)) == flatten_CHW(x) @ M + b_row
    with exact PyTorch Conv2d semantics (zero padding, stride, OIHW weights).
    Built once at init with NumPy; largest instance here is 1024x512.
    """
    w = np.asarray(w_oihw, np.float32)
    b = np.asarray(b, np.float32)
    OC, IC, K, _ = w.shape
    OH = (H + 2 * pad - K) // stride + 1
    OW = (W + 2 * pad - K) // stride + 1
    M = np.zeros((IC * H * W, OC * OH * OW), np.float32)
    for oc in range(OC):
        for oh in range(OH):
            for ow in range(OW):
                col = (oc * OH + oh) * OW + ow
                for kh in range(K):
                    ih = oh * stride + kh - pad
                    if ih < 0 or ih >= H:
                        continue
                    for kw in range(K):
                        iw = ow * stride + kw - pad
                        if iw < 0 or iw >= W:
                            continue
                        rows = (np.arange(IC) * H + ih) * W + iw
                        M[rows, col] = w[oc, :, kh, kw]
    b_row = np.repeat(b, OH * OW)[None, :]
    return M, b_row, (OH, OW)


def prepare_pallas_params(params, compute_dtype=jnp.bfloat16):
    """One-time prep: conv -> dense GEMM expansion, FC transpose, dtype casts."""
    layers = []
    hw = IMG_HW
    for (w, b, s, p) in params["convs"]:
        M, b_row, hw = _conv_as_matrix(w, b, hw[0], hw[1], s, p)
        layers.append((jnp.asarray(M, compute_dtype),
                       jnp.asarray(b_row, jnp.float32)))
    w_fc, b_fc = params["fc"]
    # CHW flatten order is preserved by the dense conv maps above, so the FC
    # weight needs no row permutation -- just the hoisted (out,in)->(in,out) T.
    layers.append((jnp.asarray(np.asarray(w_fc).T, compute_dtype),
                   jnp.asarray(np.asarray(b_fc)[None, :], jnp.float32)))
    return layers


# ----------------------------------------------------------------------------
# Fused Pallas kernel: chain of (matmul + bias + ReLU), everything VMEM-resident.
# ----------------------------------------------------------------------------
def _fused_mlp_kernel(x_ref, *refs, compute_dtype):
    o_ref = refs[-1]
    wb_refs = refs[:-1]                      # (w0, b0, w1, b1, w2, b2)
    h = x_ref[...]                           # (BM, 1024) bf16
    for i in range(0, len(wb_refs), 2):      # unrolled at trace time (3 layers)
        w_ref, b_ref = wb_refs[i], wb_refs[i + 1]
        acc = jnp.dot(h.astype(compute_dtype), w_ref[...],
                      preferred_element_type=jnp.float32)      # MXU, f32 accum
        h = jnp.maximum(acc + b_ref[...], 0.0)                 # bias + ReLU
    o_ref[...] = h.astype(o_ref.dtype)


def feature_extractor_forward(prep_layers, obs_nchw, *, block_m=256):
    """obs_nchw: (N, C, H, W) float32 -> features: (N, FEATURES_OUT) float32."""
    n = obs_nchw.shape[0]
    in_dim = prep_layers[0][0].shape[0]
    out_dim = prep_layers[-1][0].shape[1]
    compute_dtype = prep_layers[0][0].dtype

    # Contiguous CHW flatten (free reshape, matches nn.Flatten order) + bf16 cast.
    x = obs_nchw.reshape(n, -1).astype(compute_dtype)
    assert x.shape[1] == in_dim

    # Batch tiling: pad rows to a multiple of the block; grid axis is 'parallel'
    # so v7x's two TensorCores split the rows.  Padded rows are zeros (harmless).
    bm = min(block_m, _round_up(n, 8))
    pb = _round_up(n, bm)
    if pb != n:
        x = jnp.pad(x, ((0, pb - n), (0, 0)))

    in_specs = [pl.BlockSpec((bm, in_dim), lambda i: (i, 0))]
    operands = [x]
    flops = 0
    for (w, b) in prep_layers:
        K, N = w.shape
        in_specs.append(pl.BlockSpec((K, N), lambda i: (0, 0)))   # resident weight
        in_specs.append(pl.BlockSpec((1, N), lambda i: (0, 0)))   # resident bias
        operands += [w, b]
        flops += 2 * pb * K * N
    out_specs = pl.BlockSpec((bm, out_dim), lambda i: (i, 0))

    bytes_accessed = sum(int(np.prod(a.shape)) * a.dtype.itemsize for a in operands)
    bytes_accessed += pb * out_dim * 4

    out = pl.pallas_call(
        functools.partial(_fused_mlp_kernel, compute_dtype=compute_dtype),
        out_shape=jax.ShapeDtypeStruct((pb, out_dim), jnp.float32),
        grid_spec=pltpu.PrefetchScalarGridSpec(
            num_scalar_prefetch=0,
            grid=(pb // bm,),
            in_specs=in_specs,
            out_specs=out_specs),
        compiler_params=pltpu.CompilerParams(
            dimension_semantics=("parallel",),
            vmem_limit_bytes=32 * 1024 * 1024),
        cost_estimate=pl.CostEstimate(flops=flops, transcendentals=0,
                                      bytes_accessed=bytes_accessed),
    )(*operands)
    return out[:n]


# ----------------------------------------------------------------------------
# Pure-JAX f32 reference (PyTorch semantics) for a loose numerical cross-check.
# ----------------------------------------------------------------------------
def reference_forward(params, obs_nchw):
    x = obs_nchw
    for (w, b, s, p) in params["convs"]:
        x = lax.conv_general_dilated(
            x, w, window_strides=(s, s), padding=[(p, p), (p, p)],
            dimension_numbers=("NCHW", "OIHW", "NCHW"))
        x = jnp.maximum(x + b[None, :, None, None], 0.0)
    x = x.reshape(x.shape[0], -1)
    w_fc, b_fc = params["fc"]
    return jnp.maximum(x @ w_fc.T + b_fc[None, :], 0.0)


if __name__ == "__main__":
    key = jax.random.PRNGKey(0)
    key, pkey, okey = jax.random.split(key, 3)
    params = init_params(pkey)
    prep = prepare_pallas_params(params)        # one-time weight prep (hoisted)

    obs = jax.random.normal(okey, (2, 4, 16, 16), jnp.float32)   # (N, C, H, W)

    feats = feature_extractor_forward(prep, obs)
    feats = jax.block_until_ready(feats)
    assert feats.shape == (2, FEATURES_OUT) and feats.dtype == jnp.float32

    # bf16 matmul operands (f32 accumulation) -> loose tolerance vs f32 reference.
    ref = jax.block_until_ready(reference_forward(params, obs))
    assert np.allclose(np.asarray(feats), np.asarray(ref), rtol=0.1, atol=0.1), (
        float(np.abs(np.asarray(feats) - np.asarray(ref)).max()))
    print("KERNEL_OK")
</pallas_src>

<mosaic_0001>
module attributes {stable_mosaic.version = 11 : i64} {
  func.func @_fused_mlp_kernel(%arg0: i32, %arg1: memref<8x1024xbf16, #tpu.memory_space<vmem>>, %arg2: memref<1024x512xbf16, #tpu.memory_space<vmem>>, %arg3: memref<1x512xf32, #tpu.memory_space<vmem>>, %arg4: memref<512x256xbf16, #tpu.memory_space<vmem>>, %arg5: memref<1x256xf32, #tpu.memory_space<vmem>>, %arg6: memref<256x32xbf16, #tpu.memory_space<vmem>>, %arg7: memref<1x32xf32, #tpu.memory_space<vmem>>, %arg8: memref<8x32xf32, #tpu.memory_space<vmem>>) attributes {dimension_semantics = [#tpu.dimension_semantics<parallel>], iteration_bounds = array<i64: 1>, scalar_prefetch = 0 : i64, scratch_operands = 0 : i64, tpu.core_type = #tpu.core_type<tc>, window_params = [{transform_indices = @transform_0, window_bounds = array<i64: 8, 1024>}, {pipeline_mode = #tpu.pipeline_mode<synchronous>, transform_indices = @transform_1, window_bounds = array<i64: 1024, 512>}, {pipeline_mode = #tpu.pipeline_mode<synchronous>, transform_indices = @transform_2, window_bounds = array<i64: 1, 512>}, {pipeline_mode = #tpu.pipeline_mode<synchronous>, transform_indices = @transform_3, window_bounds = array<i64: 512, 256>}, {pipeline_mode = #tpu.pipeline_mode<synchronous>, transform_indices = @transform_4, window_bounds = array<i64: 1, 256>}, {pipeline_mode = #tpu.pipeline_mode<synchronous>, transform_indices = @transform_5, window_bounds = array<i64: 256, 32>}, {pipeline_mode = #tpu.pipeline_mode<synchronous>, transform_indices = @transform_6, window_bounds = array<i64: 1, 32>}, {transform_indices = @transform_7, window_bounds = array<i64: 8, 32>}]} {
    %c0 = arith.constant 0 : index
    %c0_0 = arith.constant 0 : index
    %0 = vector.load %arg1[%c0, %c0_0] : memref<8x1024xbf16, #tpu.memory_space<vmem>>, vector<8x1024xbf16>
    %c0_1 = arith.constant 0 : index
    %c0_2 = arith.constant 0 : index
    %1 = vector.load %arg2[%c0_1, %c0_2] : memref<1024x512xbf16, #tpu.memory_space<vmem>>, vector<1024x512xbf16>
    %cst = arith.constant dense<0.000000e+00> : vector<8x512xf32>
    %2 = tpu.matmul %0, %1, %cst {dimension_numbers = #tpu.dot_dimension_numbers<[1], [0], [0], [1], [0, 0, 1, 1], [], []>} : vector<8x1024xbf16>, vector<1024x512xbf16>, vector<8x512xf32> -> vector<8x512xf32>
    %c0_3 = arith.constant 0 : index
    %c0_4 = arith.constant 0 : index
    %3 = vector.load %arg3[%c0_3, %c0_4] : memref<1x512xf32, #tpu.memory_space<vmem>>, vector<1x512xf32>
    %4 = vector.broadcast %3 : vector<1x512xf32> to vector<8x512xf32>
    %5 = arith.addf %2, %4 : vector<8x512xf32>
    %cst_5 = arith.constant 0.000000e+00 : f32
    %6 = vector.broadcast %cst_5 : f32 to vector<8x512xf32>
    %7 = arith.maximumf %5, %6 : vector<8x512xf32>
    %8 = arith.truncf %7 : vector<8x512xf32> to vector<8x512xbf16>
    %c0_6 = arith.constant 0 : index
    %c0_7 = arith.constant 0 : index
    %9 = vector.load %arg4[%c0_6, %c0_7] : memref<512x256xbf16, #tpu.memory_space<vmem>>, vector<512x256xbf16>
    %cst_8 = arith.constant dense<0.000000e+00> : vector<8x256xf32>
    %10 = tpu.matmul %8, %9, %cst_8 {dimension_numbers = #tpu.dot_dimension_numbers<[1], [0], [0], [1], [0, 0, 1, 1], [], []>} : vector<8x512xbf16>, vector<512x256xbf16>, vector<8x256xf32> -> vector<8x256xf32>
    %c0_9 = arith.constant 0 : index
    %c0_10 = arith.constant 0 : index
    %11 = vector.load %arg5[%c0_9, %c0_10] : memref<1x256xf32, #tpu.memory_space<vmem>>, vector<1x256xf32>
    %12 = vector.broadcast %11 : vector<1x256xf32> to vector<8x256xf32>
    %13 = arith.addf %10, %12 : vector<8x256xf32>
    %cst_11 = arith.constant 0.000000e+00 : f32
    %14 = vector.broadcast %cst_11 : f32 to vector<8x256xf32>
    %15 = arith.maximumf %13, %14 : vector<8x256xf32>
    %16 = arith.truncf %15 : vector<8x256xf32> to vector<8x256xbf16>
    %c0_12 = arith.constant 0 : index
    %c0_13 = arith.constant 0 : index
    %17 = vector.load %arg6[%c0_12, %c0_13] : memref<256x32xbf16, #tpu.memory_space<vmem>>, vector<256x32xbf16>
    %cst_14 = arith.constant dense<0.000000e+00> : vector<8x32xf32>
    %18 = tpu.matmul %16, %17, %cst_14 {dimension_numbers = #tpu.dot_dimension_numbers<[1], [0], [0], [1], [0, 0, 1, 1], [], []>} : vector<8x256xbf16>, vector<256x32xbf16>, vector<8x32xf32> -> vector<8x32xf32>
    %c0_15 = arith.constant 0 : index
    %c0_16 = arith.constant 0 : index
    %19 = vector.load %arg7[%c0_15, %c0_16] : memref<1x32xf32, #tpu.memory_space<vmem>>, vector<1x32xf32>
    %20 = vector.broadcast %19 : vector<1x32xf32> to vector<8x32xf32>
    %21 = arith.addf %18, %20 : vector<8x32xf32>
    %cst_17 = arith.constant 0.000000e+00 : f32
    %22 = vector.broadcast %cst_17 : f32 to vector<8x32xf32>
    %23 = arith.maximumf %21, %22 : vector<8x32xf32>
    %c0_18 = arith.constant 0 : index
    %c0_19 = arith.constant 0 : index
    %24 = vector.load %arg8[%c0_18, %c0_19] : memref<8x32xf32, #tpu.memory_space<vmem>>, vector<8x32xf32>
    tpu.vector_store %arg8[%c0_18, %c0_19], %23 {strides = array<i32>} : memref<8x32xf32, #tpu.memory_space<vmem>>, vector<8x32xf32>,
    return
  }
  func.func @transform_0(%arg0: i32) -> (i32, i32) {
    %c0_i32 = arith.constant 0 : i32
    %c0_i32_0 = arith.constant 0 : i32
    return %arg0, %c0_i32 : i32, i32
  }
  func.func @transform_1(%arg0: i32) -> (i32, i32) {
    %c0_i32 = arith.constant 0 : i32
    %c0_i32_0 = arith.constant 0 : i32
    %c0_i32_1 = arith.constant 0 : i32
    return %c0_i32, %c0_i32_0 : i32, i32
  }
  func.func @transform_2(%arg0: i32) -> (i32, i32) {
    %c0_i32 = arith.constant 0 : i32
    %c0_i32_0 = arith.constant 0 : i32
    %c0_i32_1 = arith.constant 0 : i32
    return %c0_i32, %c0_i32_0 : i32, i32
  }
  func.func @transform_3(%arg0: i32) -> (i32, i32) {
    %c0_i32 = arith.constant 0 : i32
    %c0_i32_0 = arith.constant 0 : i32
    %c0_i32_1 = arith.constant 0 : i32
    return %c0_i32, %c0_i32_0 : i32, i32
  }
  func.func @transform_4(%arg0: i32) -> (i32, i32) {
    %c0_i32 = arith.constant 0 : i32
    %c0_i32_0 = arith.constant 0 : i32
    %c0_i32_1 = arith.constant 0 : i32
    return %c0_i32, %c0_i32_0 : i32, i32
  }
  func.func @transform_5(%arg0: i32) -> (i32, i32) {
    %c0_i32 = arith.constant 0 : i32
    %c0_i32_0 = arith.constant 0 : i32
    %c0_i32_1 = arith.constant 0 : i32
    return %c0_i32, %c0_i32_0 : i32, i32
  }
  func.func @transform_6(%arg0: i32) -> (i32, i32) {
    %c0_i32 = arith.constant 0 : i32
    %c0_i32_0 = arith.constant 0 : i32
    %c0_i32_1 = arith.constant 0 : i32
    return %c0_i32, %c0_i32_0 : i32, i32
  }
  func.func @transform_7(%arg0: i32) -> (i32, i32) {
    %c0_i32 = arith.constant 0 : i32
    %c0_i32_0 = arith.constant 0 : i32
    return %arg0, %c0_i32 : i32, i32
  }
}

</mosaic_0001>

<bundles_post_ra>
// kernel: tpu_custom_call.1
= control target key start
LH: loop header
LB: loop body
LE: loop exit
PB: predicated region body
PF: predicated region fallthrough
CT: control target
= control target key end

     0   :  { %12 = vsyncpa [#allocation3], 0  ;;  %s3803_s0 = inlined_call_operand.vmem [shape: bf16[8,1024], index: 0, kind: input, shape index: {}]   ;;  %s3804_s1 = inlined_call_operand.hbm [shape: bf16[1024,512], index: 1, kind: input, shape index: {}]   ;;  %s3805_s2 = inlined_call_operand.vmem [shape: f32[1,512], index: 2, kind: input, shape index: {}]   ;;  %s3806_s3 = inlined_call_operand.hbm [shape: bf16[512,256], index: 3, kind: input, shape index: {}]   ;;  %s3807_s4 = inlined_call_operand.vmem [shape: f32[1,256], index: 4, kind: input, shape index: {}]   ;;  %s3808_s5 = inlined_call_operand.vmem [shape: bf16[256,32], index: 5, kind: input, shape index: {}]   ;;  %s3809_s6 = inlined_call_operand.vmem [shape: f32[1,32], index: 6, kind: input, shape index: {}]   ;;  %s3810_s7 = inlined_call_operand.hbm [shape: f32[8,32], index: 7, kind: output, shape index: {}]  }
   0x1   :  { %13 = vsyncpa [#allocation6], 0 }
   0x2   :  { %14 = vsyncpa [#allocation4], 0  ;;  %s3602_s24 = smov [#allocation2]  }
   0x3   :  { %s22_s25 = sshll.u32 %s3602_s24, 4  ;;  %s23_s25 = int_to_ptr.vmem [resolvable:$true] %s22_s25 }
   0x4   :  { %s3544_s26 = scalar_lea.vmem %s23_s25, 32768  ;;  %p3549_p1 = scmp.lt.s32.totalorder %s23_s25, %s23_s25 }
   0x5   :  { %p3545_p0 = scmp.ne.s32.totalorder %s23_s25, %s3544_s26  ;;  %p3550_p2 = scmp.lt.s32.totalorder %s3544_s26, %s3544_s26 }
   0x7   :  { %p3551_p3 = por %p3550_p2, %p3549_p1 }
   0x9   :  { %p3552_p4 = pnand %p3551_p3, %p3545_p0 }
   0xb   :  { %3555 = shalt.err (!%p3552_p4)
}
   0xc   :  { %s3603_s27 = smov 256   ;;  %s3604_s28 = smov 16  }
   0xd   :  { %28 = dma.hbm_to_vmem [thread:$0]  %s3804_s1, 32768, %s23_s25, [#allocation3], %s3603_s27, %s3603_s27, %s3604_s28  }
   0xe   :  { %s3605_s8 = smov [#allocation5]  }
   0xf   :  { %s36_s9 = sshll.u32 %s3605_s8, 4  ;;  %s37_s9 = int_to_ptr.vmem [resolvable:$true] %s36_s9 }
  0x10   :  { %s3564_s10 = scalar_lea.vmem %s37_s9, 8192  ;;  %p3569_p6 = scmp.lt.s32.totalorder %s37_s9, %s37_s9 }
  0x11   :  { %p3565_p5 = scmp.ne.s32.totalorder %s37_s9, %s3564_s10  ;;  %p3570_p7 = scmp.lt.s32.totalorder %s3564_s10, %s3564_s10 }
  0x13   :  { %p3571_p8 = por %p3570_p7, %p3569_p6 }
  0x15   :  { %p3572_p9 = pnand %p3571_p8, %p3565_p5 }
  0x17   :  { %3575 = shalt.err (!%p3572_p9)
}
  0x18   :  { %s3606_s11 = smov 128   ;;  %s3607_s12 = smov 8  }
  0x19   :  { %42 = dma.hbm_to_vmem [thread:$0]  %s3806_s3, 8192, %s37_s9, [#allocation6], %s3606_s11, %s3606_s11, %s3607_s12  }
  0x1a   :  { %3596 = dma.done.wait [#allocation3], 32768  }
  0x1b   :  { %3597 = vsyncadd [#allocation3], 4294934528 }
  0x1c   :  { %3598 = dma.done.wait [#allocation6], 8192  }
  0x1d   :  { %3599 = vsyncadd [#allocation6], 4294959104  ;;  %v3032_v0 = vld [vmem:[#allocation2 + $0xe4] ss:$16 sps:$4 sm:$0xff]   ;;  %v3036_v2 = vld [vmem:[#allocation2 + $0xe0] ss:$16 sps:$4 sm:$0xff]  }
  0x1e   :  { %v3034_v1 = vld [vmem:[#allocation2 + $0x2e4] ss:$16 sps:$4 sm:$0xff]   ;;  %1646 = vmatprep.subr.bf16.mxu0 %v3032_v0  ;;  %v3037_v3 = vld [vmem:[#allocation2 + $0x2e0] ss:$16 sps:$4 sm:$0xff]   ;;  %v57_v48 = vld [vmem:[%s3803_s0 + $0x8] sm:$0xff]  ;;  %s3608_s28 = smov [#allocation7]  }
  0x1f   :  { %1687 = vmatprep.subr.bf16.mxu1 %v3034_v1  ;;  %v3038_v4 = vld [vmem:[#allocation2 + $0xc4] ss:$16 sps:$4 sm:$0xff]   ;;  %1647 = vmatpush1.bf16.msra.mxu0 %v3036_v2  ;;  %v3042_v6 = vld [vmem:[#allocation2 + $0xc0] ss:$16 sps:$4 sm:$0xff]   ;;  %v3663_v51 = vcombine.high %v57_v48, %v57_v48  ;;  %s2648_s29 = sshll.u32 %s3608_s28, 4  ;;  %vm2640_vm0 = vcmask 261120   ;;  %s2649_s29 = int_to_ptr.vmem [resolvable:$true] %s2648_s29 }
  0x20   :  { %1688 = vmatpush1.bf16.msra.mxu1 %v3037_v3  ;;  %v3040_v5 = vld [vmem:[#allocation2 + $0x2c4] ss:$16 sps:$4 sm:$0xff]   ;;  %1648 = vmatprep.subr.bf16.mxu0 %v3038_v4  ;;  %v3043_v7 = vld [vmem:[#allocation2 + $0x2c0] ss:$16 sps:$4 sm:$0xff]   ;;  %s3576_s30 = scalar_lea.vmem %s2649_s29, 128  ;;  %p3581_p11 = scmp.lt.s32.totalorder %s2649_s29, %s2649_s29 }
  0x21   :  { %1689 = vmatprep.subr.bf16.mxu1 %v3040_v5  ;;  %v3044_v8 = vld [vmem:[#allocation2 + $0xa4] ss:$16 sps:$4 sm:$0xff]   ;;  %v3048_v10 = vld [vmem:[#allocation2 + $0xa0] ss:$16 sps:$4 sm:$0xff]   ;;  %1719 = vmatprep.mubr.bf16.mxu1 %v3663_v51  ;;  %p3577_p10 = scmp.ne.s32.totalorder %s2649_s29, %s3576_s30  ;;  %p3582_p12 = scmp.lt.s32.totalorder %s3576_s30, %s3576_s30 }
  0x22   :  { %v3046_v9 = vld [vmem:[#allocation2 + $0x2a4] ss:$16 sps:$4 sm:$0xff]   ;;  %v3049_v11 = vld [vmem:[#allocation2 + $0x2a0] ss:$16 sps:$4 sm:$0xff]  }
  0x23   :  { %1649 = vmatpush1.bf16.msra.mxu0 %v3042_v6  ;;  %v3050_v12 = vld [vmem:[#allocation2 + $0x84] ss:$16 sps:$4 sm:$0xff]   ;;  %v3054_v14 = vld [vmem:[#allocation2 + $0x80] ss:$16 sps:$4 sm:$0xff]   ;;  %p3583_p13 = por %p3582_p12, %p3581_p11 }
  0x24   :  { %1690 = vmatpush1.bf16.msra.mxu1 %v3043_v7  ;;  %1650 = vmatprep.subr.bf16.mxu0 %v3044_v8  ;;  %v3052_v13 = vld [vmem:[#allocation2 + $0x284] ss:$16 sps:$4 sm:$0xff]   ;;  %v3055_v15 = vld [vmem:[#allocation2 + $0x280] ss:$16 sps:$4 sm:$0xff]   ;;  %v3669_v7 = vcombine.low %v57_v48, %v57_v48 }
  0x25   :  { %1691 = vmatprep.subr.bf16.mxu1 %v3046_v9  ;;  %v3056_v16 = vld [vmem:[#allocation2 + $0x64] ss:$16 sps:$4 sm:$0xff]   ;;  %v3060_v18 = vld [vmem:[#allocation2 + $0x60] ss:$16 sps:$4 sm:$0xff]   ;;  %p3584_p0 = pnand %p3583_p13, %p3577_p10 }
  0x26   :  { %v3058_v17 = vld [vmem:[#allocation2 + $0x264] ss:$16 sps:$4 sm:$0xff]   ;;  %v3061_v19 = vld [vmem:[#allocation2 + $0x260] ss:$16 sps:$4 sm:$0xff]  }
  0x27   :  { %1651 = vmatpush1.bf16.msra.mxu0 %v3048_v10  ;;  %v3062_v20 = vld [vmem:[#allocation2 + $0x44] ss:$16 sps:$4 sm:$0xff]   ;;  %v3066_v22 = vld [vmem:[#allocation2 + $0x40] ss:$16 sps:$4 sm:$0xff]  }
  0x28   :  { %1692 = vmatpush1.bf16.msra.mxu1 %v3049_v11  ;;  %1652 = vmatprep.subr.bf16.mxu0 %v3050_v12  ;;  %v3064_v21 = vld [vmem:[#allocation2 + $0x244] ss:$16 sps:$4 sm:$0xff]   ;;  %v3067_v23 = vld [vmem:[#allocation2 + $0x240] ss:$16 sps:$4 sm:$0xff]  }
  0x29   :  { %1693 = vmatprep.subr.bf16.mxu1 %v3052_v13  ;;  %v3068_v24 = vld [vmem:[#allocation2 + $0x24] ss:$16 sps:$4 sm:$0xff]   ;;  %v3072_v26 = vld [vmem:[#allocation2 + $0x20] ss:$16 sps:$4 sm:$0xff]  }
  0x2a   :  { %v3070_v25 = vld [vmem:[#allocation2 + $0x224] ss:$16 sps:$4 sm:$0xff]   ;;  %v3073_v27 = vld [vmem:[#allocation2 + $0x220] ss:$16 sps:$4 sm:$0xff]  }
  0x2b   :  { %1653 = vmatpush1.bf16.msra.mxu0 %v3054_v14  ;;  %v3074_v28 = vld [vmem:[#allocation2 + $0x4] ss:$16 sps:$4 sm:$0xff]   ;;  %v3078_v30 = vld [vmem:[#allocation2] ss:$16 sps:$4 sm:$0xff]  }
  0x2c   :  { %1694 = vmatpush1.bf16.msra.mxu1 %v3055_v15  ;;  %1654 = vmatprep.subr.bf16.mxu0 %v3056_v16  ;;  %v3076_v29 = vld [vmem:[#allocation2 + $0x204] ss:$16 sps:$4 sm:$0xff]   ;;  %v3079_v31 = vld [vmem:[#allocation2 + $0x200] ss:$16 sps:$4 sm:$0xff]  }
  0x2d   :  { %1695 = vmatprep.subr.bf16.mxu1 %v3058_v17  ;;  %v3080_v32 = vld [vmem:[#allocation2 + $0x1e4] ss:$16 sps:$4 sm:$0xff]   ;;  %v3084_v34 = vld [vmem:[#allocation2 + $0x1e0] ss:$16 sps:$4 sm:$0xff]  }
  0x2e   :  { %v3082_v33 = vld [vmem:[#allocation2 + $0x3e4] ss:$16 sps:$4 sm:$0xff]   ;;  %v3085_v35 = vld [vmem:[#allocation2 + $0x3e0] ss:$16 sps:$4 sm:$0xff]  }
  0x2f   :  { %1655 = vmatpush1.bf16.msra.mxu0 %v3060_v18  ;;  %v3086_v36 = vld [vmem:[#allocation2 + $0x1c4] ss:$16 sps:$4 sm:$0xff]   ;;  %v3090_v38 = vld [vmem:[#allocation2 + $0x1c0] ss:$16 sps:$4 sm:$0xff]  }
  0x30   :  { %1696 = vmatpush1.bf16.msra.mxu1 %v3061_v19  ;;  %1656 = vmatprep.subr.bf16.mxu0 %v3062_v20  ;;  %v3088_v37 = vld [vmem:[#allocation2 + $0x3c4] ss:$16 sps:$4 sm:$0xff]   ;;  %v3091_v39 = vld [vmem:[#allocation2 + $0x3c0] ss:$16 sps:$4 sm:$0xff]  }
  0x31   :  { %1697 = vmatprep.subr.bf16.mxu1 %v3064_v21  ;;  %v3092_v40 = vld [vmem:[#allocation2 + $0x1a4] ss:$16 sps:$4 sm:$0xff]   ;;  %v3096_v42 = vld [vmem:[#allocation2 + $0x1a0] ss:$16 sps:$4 sm:$0xff]  }
  0x32   :  { %v3094_v41 = vld [vmem:[#allocation2 + $0x3a4] ss:$16 sps:$4 sm:$0xff]   ;;  %v3097_v43 = vld [vmem:[#allocation2 + $0x3a0] ss:$16 sps:$4 sm:$0xff]  }
  0x33   :  { %1657 = vmatpush1.bf16.msra.mxu0 %v3066_v22  ;;  %v3098_v44 = vld [vmem:[#allocation2 + $0x184] ss:$16 sps:$4 sm:$0xff]   ;;  %v3102_v49 = vld [vmem:[#allocation2 + $0x180] ss:$16 sps:$4 sm:$0xff]  }
  0x34   :  { %1698 = vmatpush1.bf16.msra.mxu1 %v3067_v23  ;;  %1658 = vmatprep.subr.bf16.mxu0 %v3068_v24  ;;  %v3100_v45 = vld [vmem:[#allocation2 + $0x384] ss:$16 sps:$4 sm:$0xff]   ;;  %v3103_v50 = vld [vmem:[#allocation2 + $0x380] ss:$16 sps:$4 sm:$0xff]  }
  0x35   :  { %1699 = vmatprep.subr.bf16.mxu1 %v3070_v25  ;;  %v56_v46 = vld [vmem:[%s3803_s0] sm:$0xff] }
  0x36   :  { %v3658_v47 = vcombine.high %v56_v46, %v56_v46  ;;  %v3104_v52 = vld [vmem:[#allocation2 + $0x164] ss:$16 sps:$4 sm:$0xff]   ;;  %v3108_v54 = vld [vmem:[#allocation2 + $0x160] ss:$16 sps:$4 sm:$0xff]   ;;  %v3667_v6 = vcombine.low %v56_v46, %v56_v46 }
  0x37   :  { %1659 = vmatpush1.bf16.msra.mxu0 %v3072_v26  ;;  %v3106_v53 = vld [vmem:[#allocation2 + $0x364] ss:$16 sps:$4 sm:$0xff]   ;;  %v3109_v55 = vld [vmem:[#allocation2 + $0x360] ss:$16 sps:$4 sm:$0xff]  }
  0x38   :  { %1700 = vmatpush1.bf16.msra.mxu1 %v3073_v27  ;;  %1660 = vmatprep.subr.bf16.mxu0 %v3074_v28  ;;  %v3110_v56 = vld [vmem:[#allocation2 + $0x144] ss:$16 sps:$4 sm:$0xff]   ;;  %v3114_v58 = vld [vmem:[#allocation2 + $0x140] ss:$16 sps:$4 sm:$0xff]  }
  0x39   :  { %1701 = vmatprep.subr.bf16.mxu1 %v3076_v29  ;;  %1678 = vmatprep.mubr.bf16.mxu0 %v3658_v47  ;;  %v3112_v57 = vld [vmem:[#allocation2 + $0x344] ss:$16 sps:$4 sm:$0xff]   ;;  %v3115_v59 = vld [vmem:[#allocation2 + $0x340] ss:$16 sps:$4 sm:$0xff]  }
  0x3a   :  { %v3116_v60 = vld [vmem:[#allocation2 + $0x124] ss:$16 sps:$4 sm:$0xff]   ;;  %v3120_v62 = vld [vmem:[#allocation2 + $0x120] ss:$16 sps:$4 sm:$0xff]  }
  0x3b   :  { %1661 = vmatpush1.bf16.msra.mxu0 %v3078_v30  ;;  %v3118_v61 = vld [vmem:[#allocation2 + $0x324] ss:$16 sps:$4 sm:$0xff]   ;;  %v3121_v63 = vld [vmem:[#allocation2 + $0x320] ss:$16 sps:$4 sm:$0xff]  }
  0x3c   :  { %1702 = vmatpush1.bf16.msra.mxu1 %v3079_v31  ;;  %1662 = vmatprep.subr.bf16.mxu0 %v3080_v32  ;;  %v3122_v0 = vld [vmem:[#allocation2 + $0x104] ss:$16 sps:$4 sm:$0xff]   ;;  %v3126_v2 = vld [vmem:[#allocation2 + $0x100] ss:$16 sps:$4 sm:$0xff]  }
  0x3d   :  { %1703 = vmatprep.subr.bf16.mxu1 %v3082_v33  ;;  %v3124_v1 = vld [vmem:[#allocation2 + $0x304] ss:$16 sps:$4 sm:$0xff]   ;;  %v3127_v3 = vld [vmem:[#allocation2 + $0x300] ss:$16 sps:$4 sm:$0xff]   ;;  %v3681_v33 = vld [vmem:[%s3803_s0 + $0x18] sm:$0xff] }
  0x3e   :  { %v3134_v4 = vld [vmem:[#allocation2 + $0x4e4] ss:$16 sps:$4 sm:$0xff]   ;;  %v3132_v8 = vld [vmem:[#allocation2 + $0x4e0] ss:$16 sps:$4 sm:$0xff]  }
  0x3f   :  { %1663 = vmatpush2.bf16.msra.mxu0 %v3084_v34  ;;  %v3137_v5 = vld [vmem:[#allocation2 + $0x6e4] ss:$16 sps:$4 sm:$0xff]   ;;  %v3135_v9 = vld [vmem:[#allocation2 + $0x6e0] ss:$16 sps:$4 sm:$0xff]  }
  0x40   :  { %1704 = vmatpush2.bf16.msra.mxu1 %v3085_v35  ;;  %1664 = vmatprep.subr.bf16.mxu0 %v3086_v36  ;;  %v3140_v10 = vld [vmem:[#allocation2 + $0x4c4] ss:$16 sps:$4 sm:$0xff]   ;;  %v3138_v12 = vld [vmem:[#allocation2 + $0x4c0] ss:$16 sps:$4 sm:$0xff]  }
  0x41   :  { %1705 = vmatprep.subr.bf16.mxu1 %v3088_v37  ;;  %v3143_v11 = vld [vmem:[#allocation2 + $0x6c4] ss:$16 sps:$4 sm:$0xff]   ;;  %v3141_v13 = vld [vmem:[#allocation2 + $0x6c0] ss:$16 sps:$4 sm:$0xff]   ;;  %v3689_v37 = vcombine.high %v3681_v33, %v3681_v33 }
  0x42   :  { %v3146_v14 = vld [vmem:[#allocation2 + $0x4a4] ss:$16 sps:$4 sm:$0xff]   ;;  %v3144_v16 = vld [vmem:[#allocation2 + $0x4a0] ss:$16 sps:$4 sm:$0xff]  }
  0x43   :  { %1665 = vmatpush2.bf16.msra.mxu0 %v3090_v38  ;;  %v3149_v15 = vld [vmem:[#allocation2 + $0x6a4] ss:$16 sps:$4 sm:$0xff]   ;;  %v3147_v17 = vld [vmem:[#allocation2 + $0x6a0] ss:$16 sps:$4 sm:$0xff]  }
  0x44   :  { %1706 = vmatpush2.bf16.msra.mxu1 %v3091_v39  ;;  %1666 = vmatprep.subr.bf16.mxu0 %v3092_v40  ;;  %v3152_v18 = vld [vmem:[#allocation2 + $0x484] ss:$16 sps:$4 sm:$0xff]   ;;  %v3150_v20 = vld [vmem:[#allocation2 + $0x480] ss:$16 sps:$4 sm:$0xff]  }
  0x45   :  { %1707 = vmatprep.subr.bf16.mxu1 %v3094_v41  ;;  %v3155_v19 = vld [vmem:[#allocation2 + $0x684] ss:$16 sps:$4 sm:$0xff]   ;;  %v3153_v21 = vld [vmem:[#allocation2 + $0x680] ss:$16 sps:$4 sm:$0xff]  }
  0x46   :  { %v3158_v22 = vld [vmem:[#allocation2 + $0x464] ss:$16 sps:$4 sm:$0xff]   ;;  %v3156_v24 = vld [vmem:[#allocation2 + $0x460] ss:$16 sps:$4 sm:$0xff]  }
  0x47   :  { %1667 = vmatpush2.bf16.msra.mxu0 %v3096_v42  ;;  %v3161_v23 = vld [vmem:[#allocation2 + $0x664] ss:$16 sps:$4 sm:$0xff]   ;;  %v3159_v25 = vld [vmem:[#allocation2 + $0x660] ss:$16 sps:$4 sm:$0xff]  }
  0x48   :  { %1708 = vmatpush2.bf16.msra.mxu1 %v3097_v43  ;;  %1668 = vmatprep.subr.bf16.mxu0 %v3098_v44  ;;  %v3164_v26 = vld [vmem:[#allocation2 + $0x444] ss:$16 sps:$4 sm:$0xff]   ;;  %v3162_v28 = vld [vmem:[#allocation2 + $0x440] ss:$16 sps:$4 sm:$0xff]  }
  0x49   :  { %1709 = vmatprep.subr.bf16.mxu1 %v3100_v45  ;;  %v3167_v27 = vld [vmem:[#allocation2 + $0x644] ss:$16 sps:$4 sm:$0xff]   ;;  %v3165_v29 = vld [vmem:[#allocation2 + $0x640] ss:$16 sps:$4 sm:$0xff]  }
  0x4a   :  { %v3170_v30 = vld [vmem:[#allocation2 + $0x424] ss:$16 sps:$4 sm:$0xff]   ;;  %v3168_v34 = vld [vmem:[#allocation2 + $0x420] ss:$16 sps:$4 sm:$0xff]  }
  0x4b   :  { %1669 = vmatpush2.bf16.msra.mxu0 %v3102_v49  ;;  %v3173_v31 = vld [vmem:[#allocation2 + $0x624] ss:$16 sps:$4 sm:$0xff]   ;;  %v3171_v35 = vld [vmem:[#allocation2 + $0x620] ss:$16 sps:$4 sm:$0xff]  }
  0x4c   :  { %1710 = vmatpush2.bf16.msra.mxu1 %v3103_v50  ;;  %1670 = vmatprep.subr.bf16.mxu0 %v3104_v52  ;;  %v3676_v32 = vld [vmem:[%s3803_s0 + $0x10] sm:$0xff] }
  0x4d   :  { %1711 = vmatprep.subr.bf16.mxu1 %v3106_v53  ;;  %v3685_v36 = vcombine.high %v3676_v32, %v3676_v32  ;;  %v3176_v38 = vld [vmem:[#allocation2 + $0x404] ss:$16 sps:$4 sm:$0xff]   ;;  %v3174_v40 = vld [vmem:[#allocation2 + $0x400] ss:$16 sps:$4 sm:$0xff]  }
  0x4e   :  { %v3179_v39 = vld [vmem:[#allocation2 + $0x604] ss:$16 sps:$4 sm:$0xff]   ;;  %v3177_v41 = vld [vmem:[#allocation2 + $0x600] ss:$16 sps:$4 sm:$0xff]  }
  0x4f   :  { %1671 = vmatpush2.bf16.msra.mxu0 %v3108_v54  ;;  %v3182_v42 = vld [vmem:[#allocation2 + $0x5e4] ss:$16 sps:$4 sm:$0xff]   ;;  %v3180_v44 = vld [vmem:[#allocation2 + $0x5e0] ss:$16 sps:$4 sm:$0xff]  }
  0x50   :  { %1712 = vmatpush2.bf16.msra.mxu1 %v3109_v55  ;;  %1672 = vmatprep.subr.bf16.mxu0 %v3110_v56  ;;  %v3185_v43 = vld [vmem:[#allocation2 + $0x7e4] ss:$16 sps:$4 sm:$0xff]   ;;  %v3183_v45 = vld [vmem:[#allocation2 + $0x7e0] ss:$16 sps:$4 sm:$0xff]  }
  0x51   :  { %1713 = vmatprep.subr.bf16.mxu1 %v3112_v57  ;;  %v3188_v46 = vld [vmem:[#allocation2 + $0x5c4] ss:$16 sps:$4 sm:$0xff]   ;;  %v3186_v49 = vld [vmem:[#allocation2 + $0x5c0] ss:$16 sps:$4 sm:$0xff]  }
  0x52   :  { %v3191_v48 = vld [vmem:[#allocation2 + $0x7c4] ss:$16 sps:$4 sm:$0xff]   ;;  %v3189_v50 = vld [vmem:[#allocation2 + $0x7c0] ss:$16 sps:$4 sm:$0xff]  }
  0x53   :  { %1673 = vmatpush2.bf16.msra.mxu0 %v3114_v58  ;;  %v3194_v52 = vld [vmem:[#allocation2 + $0x5a4] ss:$16 sps:$4 sm:$0xff]   ;;  %v3192_v54 = vld [vmem:[#allocation2 + $0x5a0] ss:$16 sps:$4 sm:$0xff]  }
  0x54   :  { %1714 = vmatpush2.bf16.msra.mxu1 %v3115_v59  ;;  %1674 = vmatprep.subr.bf16.mxu0 %v3116_v60  ;;  %v3197_v53 = vld [vmem:[#allocation2 + $0x7a4] ss:$16 sps:$4 sm:$0xff]   ;;  %v3195_v55 = vld [vmem:[#allocation2 + $0x7a0] ss:$16 sps:$4 sm:$0xff]  }
  0x55   :  { %1715 = vmatprep.subr.bf16.mxu1 %v3118_v61  ;;  %v3200_v56 = vld [vmem:[#allocation2 + $0x584] ss:$16 sps:$4 sm:$0xff]   ;;  %v3198_v58 = vld [vmem:[#allocation2 + $0x580] ss:$16 sps:$4 sm:$0xff]  }
  0x56   :  { %v3203_v57 = vld [vmem:[#allocation2 + $0x784] ss:$16 sps:$4 sm:$0xff]   ;;  %v3201_v59 = vld [vmem:[#allocation2 + $0x780] ss:$16 sps:$4 sm:$0xff]  }
  0x57   :  { %1675 = vmatpush2.bf16.msra.mxu0 %v3120_v62  ;;  %v3206_v60 = vld [vmem:[#allocation2 + $0x564] ss:$16 sps:$4 sm:$0xff]   ;;  %v3204_v62 = vld [vmem:[#allocation2 + $0x560] ss:$16 sps:$4 sm:$0xff]  }
  0x58   :  { %1716 = vmatpush2.bf16.msra.mxu1 %v3121_v63  ;;  %1676 = vmatprep.subr.bf16.mxu0 %v3122_v0  ;;  %v3209_v61 = vld [vmem:[#allocation2 + $0x764] ss:$16 sps:$4 sm:$0xff]   ;;  %v3207_v63 = vld [vmem:[#allocation2 + $0x760] ss:$16 sps:$4 sm:$0xff]  }
  0x59   :  { %1717 = vmatprep.subr.bf16.mxu1 %v3124_v1  ;;  %v3212_v0 = vld [vmem:[#allocation2 + $0x544] ss:$16 sps:$4 sm:$0xff]  }
  0x5a   :  { %v3215_v1 = vld [vmem:[#allocation2 + $0x744] ss:$16 sps:$4 sm:$0xff]  }
  0x5b   :  { %1677 = vmatpush2.bf16.msra.mxu0 %v3126_v2  ;;  %v3210_v2 = vld [vmem:[#allocation2 + $0x540] ss:$16 sps:$4 sm:$0xff]  }
  0x5c   :  { %1718 = vmatpush2.bf16.msra.mxu1 %v3127_v3  ;;  %1728 = vmatprep.subr.bf16.mxu0 %v3134_v4  ;;  %v3213_v3 = vld [vmem:[#allocation2 + $0x740] ss:$16 sps:$4 sm:$0xff]   ;;  %v3218_v4 = vld [vmem:[#allocation2 + $0x524] ss:$16 sps:$4 sm:$0xff]  }
  0x5d   :  { %1769 = vmatprep.subr.bf16.mxu1 %v3137_v5  ;;  %v3221_v5 = vld [vmem:[#allocation2 + $0x724] ss:$16 sps:$4 sm:$0xff]  }
  0x5e   :  { %1679 = vmatmul.mubr.bf16.vlgmr.msra.gmra.mxu0 %v3667_v6 }
  0x5f   :  { %1720 = vmatmul.mubr.bf16.vlgmr.msra.gmra.mxu1 %v3669_v7  ;;  %1729 = vmatpush1.bf16.msra.mxu0 %v3132_v8  ;;  %v3216_v8 = vld [vmem:[#allocation2 + $0x520] ss:$16 sps:$4 sm:$0xff]  }
  0x60   :  { %1770 = vmatpush1.bf16.msra.mxu1 %v3135_v9  ;;  %1730 = vmatprep.subr.bf16.mxu0 %v3140_v10  ;;  %v3219_v9 = vld [vmem:[#allocation2 + $0x720] ss:$16 sps:$4 sm:$0xff]   ;;  %v3224_v10 = vld [vmem:[#allocation2 + $0x504] ss:$16 sps:$4 sm:$0xff]  }
  0x61   :  { %1771 = vmatprep.subr.bf16.mxu1 %v3143_v11  ;;  %1760 = vmatprep.mubr.bf16.mxu0 %v3685_v36  ;;  %v3227_v11 = vld [vmem:[#allocation2 + $0x704] ss:$16 sps:$4 sm:$0xff]  }
  0x62   :  { %1801 = vmatprep.mubr.bf16.mxu1 %v3689_v37 }
  0x63   :  { %1731 = vmatpush1.bf16.msra.mxu0 %v3138_v12  ;;  %v3222_v12 = vld [vmem:[#allocation2 + $0x500] ss:$16 sps:$4 sm:$0xff]  }
  0x64   :  { %1772 = vmatpush1.bf16.msra.mxu1 %v3141_v13  ;;  %1732 = vmatprep.subr.bf16.mxu0 %v3146_v14  ;;  %v3225_v13 = vld [vmem:[#allocation2 + $0x700] ss:$16 sps:$4 sm:$0xff]   ;;  %v3234_v14 = vld [vmem:[#allocation2 + $0xec] ss:$16 sps:$4 sm:$0xff]  }
  0x65   :  { %1773 = vmatprep.subr.bf16.mxu1 %v3149_v15  ;;  %v3237_v15 = vld [vmem:[#allocation2 + $0x2ec] ss:$16 sps:$4 sm:$0xff]  }
  0x67   :  { %1733 = vmatpush1.bf16.msra.mxu0 %v3144_v16  ;;  %v3695_v16 = vcombine.low %v3676_v32, %v3676_v32  ;;  %v3258_v32 = vld [vmem:[#allocation2 + $0x6c] ss:$16 sps:$4 sm:$0xff]  }
  0x68   :  { %1774 = vmatpush1.bf16.msra.mxu1 %v3147_v17  ;;  %1734 = vmatprep.subr.bf16.mxu0 %v3152_v18  ;;  %v3699_v17 = vcombine.low %v3681_v33, %v3681_v33  ;;  %v3232_v18 = vld [vmem:[#allocation2 + $0xe8] ss:$16 sps:$4 sm:$0xff]   ;;  %v3261_v33 = vld [vmem:[#allocation2 + $0x26c] ss:$16 sps:$4 sm:$0xff]  }
  0x69   :  { %1775 = vmatprep.subr.bf16.mxu1 %v3155_v19  ;;  %v3235_v19 = vld [vmem:[#allocation2 + $0x2e8] ss:$16 sps:$4 sm:$0xff]  }
  0x6b   :  { %1735 = vmatpush1.bf16.msra.mxu0 %v3150_v20  ;;  %v3240_v20 = vld [vmem:[#allocation2 + $0xcc] ss:$16 sps:$4 sm:$0xff]  }
  0x6c   :  { %1776 = vmatpush1.bf16.msra.mxu1 %v3153_v21  ;;  %1736 = vmatprep.subr.bf16.mxu0 %v3158_v22  ;;  %v3243_v21 = vld [vmem:[#allocation2 + $0x2cc] ss:$16 sps:$4 sm:$0xff]   ;;  %v3238_v22 = vld [vmem:[#allocation2 + $0xc8] ss:$16 sps:$4 sm:$0xff]  }
  0x6d   :  { %1777 = vmatprep.subr.bf16.mxu1 %v3161_v23  ;;  %v3241_v23 = vld [vmem:[#allocation2 + $0x2c8] ss:$16 sps:$4 sm:$0xff]  }
  0x6f   :  { %1737 = vmatpush1.bf16.msra.mxu0 %v3156_v24  ;;  %v3246_v24 = vld [vmem:[#allocation2 + $0xac] ss:$16 sps:$4 sm:$0xff]  }
  0x70   :  { %1778 = vmatpush1.bf16.msra.mxu1 %v3159_v25  ;;  %1738 = vmatprep.subr.bf16.mxu0 %v3164_v26  ;;  %v3249_v25 = vld [vmem:[#allocation2 + $0x2ac] ss:$16 sps:$4 sm:$0xff]   ;;  %v3244_v26 = vld [vmem:[#allocation2 + $0xa8] ss:$16 sps:$4 sm:$0xff]  }
  0x71   :  { %1779 = vmatprep.subr.bf16.mxu1 %v3167_v27  ;;  %v3247_v27 = vld [vmem:[#allocation2 + $0x2a8] ss:$16 sps:$4 sm:$0xff]  }
  0x73   :  { %1739 = vmatpush1.bf16.msra.mxu0 %v3162_v28  ;;  %v3252_v28 = vld [vmem:[#allocation2 + $0x8c] ss:$16 sps:$4 sm:$0xff]  }
  0x74   :  { %1780 = vmatpush1.bf16.msra.mxu1 %v3165_v29  ;;  %1740 = vmatprep.subr.bf16.mxu0 %v3170_v30  ;;  %v3255_v29 = vld [vmem:[#allocation2 + $0x28c] ss:$16 sps:$4 sm:$0xff]   ;;  %v3250_v30 = vld [vmem:[#allocation2 + $0x88] ss:$16 sps:$4 sm:$0xff]  }
  0x75   :  { %1781 = vmatprep.subr.bf16.mxu1 %v3173_v31  ;;  %v3253_v31 = vld [vmem:[#allocation2 + $0x288] ss:$16 sps:$4 sm:$0xff]  }
  0x77   :  { %1741 = vmatpush1.bf16.msra.mxu0 %v3168_v34  ;;  %v3256_v34 = vld [vmem:[#allocation2 + $0x68] ss:$16 sps:$4 sm:$0xff]  }
  0x78   :  { %1782 = vmatpush1.bf16.msra.mxu1 %v3171_v35  ;;  %1742 = vmatprep.subr.bf16.mxu0 %v3176_v38  ;;  %v3267_v35 = vld [vmem:[#allocation2 + $0x24c] ss:$16 sps:$4 sm:$0xff]   ;;  %v3262_v38 = vld [vmem:[#allocation2 + $0x48] ss:$16 sps:$4 sm:$0xff]  }
  0x79   :  { %1783 = vmatprep.subr.bf16.mxu1 %v3179_v39  ;;  %v3265_v39 = vld [vmem:[#allocation2 + $0x248] ss:$16 sps:$4 sm:$0xff]  }
  0x7b   :  { %1743 = vmatpush1.bf16.msra.mxu0 %v3174_v40  ;;  %v3270_v40 = vld [vmem:[#allocation2 + $0x2c] ss:$16 sps:$4 sm:$0xff]  }
  0x7c   :  { %1784 = vmatpush1.bf16.msra.mxu1 %v3177_v41  ;;  %1744 = vmatprep.subr.bf16.mxu0 %v3182_v42  ;;  %v3273_v41 = vld [vmem:[#allocation2 + $0x22c] ss:$16 sps:$4 sm:$0xff]   ;;  %v3268_v42 = vld [vmem:[#allocation2 + $0x28] ss:$16 sps:$4 sm:$0xff]  }
  0x7d   :  { %1785 = vmatprep.subr.bf16.mxu1 %v3185_v43  ;;  %v3271_v43 = vld [vmem:[#allocation2 + $0x228] ss:$16 sps:$4 sm:$0xff]  }
  0x7f   :  { %1745 = vmatpush2.bf16.msra.mxu0 %v3180_v44  ;;  %v3276_v44 = vld [vmem:[#allocation2 + $0xc] ss:$16 sps:$4 sm:$0xff]  }
  0x80   :  { %1786 = vmatpush2.bf16.msra.mxu1 %v3183_v45  ;;  %1746 = vmatprep.subr.bf16.mxu0 %v3188_v46  ;;  %v3279_v45 = vld [vmem:[#allocation2 + $0x20c] ss:$16 sps:$4 sm:$0xff]   ;;  %v3274_v46 = vld [vmem:[#allocation2 + $0x8] ss:$16 sps:$4 sm:$0xff]  }
  0x81   :  { %1787 = vmatprep.subr.bf16.mxu1 %v3191_v48  ;;  %v3277_v48 = vld [vmem:[#allocation2 + $0x208] ss:$16 sps:$4 sm:$0xff]  }
  0x83   :  { %1747 = vmatpush2.bf16.msra.mxu0 %v3186_v49  ;;  %v3282_v49 = vld [vmem:[#allocation2 + $0x1ec] ss:$16 sps:$4 sm:$0xff]  }
  0x84   :  { %1788 = vmatpush2.bf16.msra.mxu1 %v3189_v50  ;;  %1748 = vmatprep.subr.bf16.mxu0 %v3194_v52  ;;  %v3285_v50 = vld [vmem:[#allocation2 + $0x3ec] ss:$16 sps:$4 sm:$0xff]   ;;  %v3280_v52 = vld [vmem:[#allocation2 + $0x1e8] ss:$16 sps:$4 sm:$0xff]  }
  0x85   :  { %1789 = vmatprep.subr.bf16.mxu1 %v3197_v53  ;;  %v3283_v53 = vld [vmem:[#allocation2 + $0x3e8] ss:$16 sps:$4 sm:$0xff]  }
  0x87   :  { %1749 = vmatpush2.bf16.msra.mxu0 %v3192_v54  ;;  %v3288_v54 = vld [vmem:[#allocation2 + $0x1cc] ss:$16 sps:$4 sm:$0xff]  }
  0x88   :  { %1790 = vmatpush2.bf16.msra.mxu1 %v3195_v55  ;;  %1750 = vmatprep.subr.bf16.mxu0 %v3200_v56  ;;  %v3291_v55 = vld [vmem:[#allocation2 + $0x3cc] ss:$16 sps:$4 sm:$0xff]   ;;  %v3286_v56 = vld [vmem:[#allocation2 + $0x1c8] ss:$16 sps:$4 sm:$0xff]  }
  0x89   :  { %1791 = vmatprep.subr.bf16.mxu1 %v3203_v57  ;;  %v3289_v57 = vld [vmem:[#allocation2 + $0x3c8] ss:$16 sps:$4 sm:$0xff]  }
  0x8b   :  { %1751 = vmatpush2.bf16.msra.mxu0 %v3198_v58  ;;  %v3294_v58 = vld [vmem:[#allocation2 + $0x1ac] ss:$16 sps:$4 sm:$0xff]  }
  0x8c   :  { %1792 = vmatpush2.bf16.msra.mxu1 %v3201_v59  ;;  %1752 = vmatprep.subr.bf16.mxu0 %v3206_v60  ;;  %v3297_v59 = vld [vmem:[#allocation2 + $0x3ac] ss:$16 sps:$4 sm:$0xff]   ;;  %v3292_v60 = vld [vmem:[#allocation2 + $0x1a8] ss:$16 sps:$4 sm:$0xff]  }
  0x8d   :  { %1793 = vmatprep.subr.bf16.mxu1 %v3209_v61  ;;  %v3295_v61 = vld [vmem:[#allocation2 + $0x3a8] ss:$16 sps:$4 sm:$0xff]  }
  0x8f   :  { %1753 = vmatpush2.bf16.msra.mxu0 %v3204_v62  ;;  %v3300_v62 = vld [vmem:[#allocation2 + $0x18c] ss:$16 sps:$4 sm:$0xff]  }
  0x90   :  { %1794 = vmatpush2.bf16.msra.mxu1 %v3207_v63  ;;  %1754 = vmatprep.subr.bf16.mxu0 %v3212_v0  ;;  %v3303_v63 = vld [vmem:[#allocation2 + $0x38c] ss:$16 sps:$4 sm:$0xff]   ;;  %v3298_v0 = vld [vmem:[#allocation2 + $0x188] ss:$16 sps:$4 sm:$0xff]  }
  0x91   :  { %1795 = vmatprep.subr.bf16.mxu1 %v3215_v1  ;;  %v3301_v1 = vld [vmem:[#allocation2 + $0x388] ss:$16 sps:$4 sm:$0xff]  }
  0x93   :  { %1755 = vmatpush2.bf16.msra.mxu0 %v3210_v2  ;;  %v3306_v2 = vld [vmem:[#allocation2 + $0x16c] ss:$16 sps:$4 sm:$0xff]  }
  0x94   :  { %1796 = vmatpush2.bf16.msra.mxu1 %v3213_v3  ;;  %1756 = vmatprep.subr.bf16.mxu0 %v3218_v4  ;;  %v3309_v3 = vld [vmem:[#allocation2 + $0x36c] ss:$16 sps:$4 sm:$0xff]   ;;  %v3304_v4 = vld [vmem:[#allocation2 + $0x168] ss:$16 sps:$4 sm:$0xff]  }
  0x95   :  { %1797 = vmatprep.subr.bf16.mxu1 %v3221_v5  ;;  %v3307_v5 = vld [vmem:[#allocation2 + $0x368] ss:$16 sps:$4 sm:$0xff]  }
  0x97   :  { %1757 = vmatpush2.bf16.msra.mxu0 %v3216_v8  ;;  %v3312_v8 = vld [vmem:[#allocation2 + $0x14c] ss:$16 sps:$4 sm:$0xff]  }
  0x98   :  { %1798 = vmatpush2.bf16.msra.mxu1 %v3219_v9  ;;  %1758 = vmatprep.subr.bf16.mxu0 %v3224_v10  ;;  %v3315_v9 = vld [vmem:[#allocation2 + $0x34c] ss:$16 sps:$4 sm:$0xff]   ;;  %v3310_v10 = vld [vmem:[#allocation2 + $0x148] ss:$16 sps:$4 sm:$0xff]  }
  0x99   :  { %1799 = vmatprep.subr.bf16.mxu1 %v3227_v11  ;;  %v3313_v11 = vld [vmem:[#allocation2 + $0x348] ss:$16 sps:$4 sm:$0xff]  }
  0x9b   :  { %1759 = vmatpush2.bf16.msra.mxu0 %v3222_v12  ;;  %v3318_v12 = vld [vmem:[#allocation2 + $0x12c] ss:$16 sps:$4 sm:$0xff]  }
  0x9c   :  { %1800 = vmatpush2.bf16.msra.mxu1 %v3225_v13  ;;  %1810 = vmatprep.subr.bf16.mxu0 %v3234_v14  ;;  %v3321_v13 = vld [vmem:[#allocation2 + $0x32c] ss:$16 sps:$4 sm:$0xff]   ;;  %v3316_v14 = vld [vmem:[#allocation2 + $0x128] ss:$16 sps:$4 sm:$0xff]  }
  0x9d   :  { %1851 = vmatprep.subr.bf16.mxu1 %v3237_v15  ;;  %v3319_v15 = vld [vmem:[#allocation2 + $0x328] ss:$16 sps:$4 sm:$0xff]  }
  0x9e   :  { %1761 = vmatmul.mubr.bf16.vlgmr.msra.gmra.mxu0 %v3695_v16 }
  0x9f   :  { %1802 = vmatmul.mubr.bf16.vlgmr.msra.gmra.mxu1 %v3699_v17  ;;  %1811 = vmatpush1.bf16.msra.mxu0 %v3232_v18  ;;  %v3324_v18 = vld [vmem:[#allocation2 + $0x10c] ss:$16 sps:$4 sm:$0xff]  }
  0xa0   :  { %1852 = vmatpush1.bf16.msra.mxu1 %v3235_v19  ;;  %1812 = vmatprep.subr.bf16.mxu0 %v3240_v20  ;;  %v3327_v19 = vld [vmem:[#allocation2 + $0x30c] ss:$16 sps:$4 sm:$0xff]   ;;  %v3322_v20 = vld [vmem:[#allocation2 + $0x108] ss:$16 sps:$4 sm:$0xff]  }
  0xa1   :  { %1853 = vmatprep.subr.bf16.mxu1 %v3243_v21  ;;  %1842 = vmatprep.mubr.bf16.mxu0 %v3658_v47  ;;  %v3259_v47 = vld [vmem:[#allocation2 + $0x268] ss:$16 sps:$4 sm:$0xff]  }
  0xa2   :  { %1883 = vmatprep.mubr.bf16.mxu1 %v3663_v51  ;;  %v3264_v51 = vld [vmem:[#allocation2 + $0x4c] ss:$16 sps:$4 sm:$0xff]   ;;  %v3325_v21 = vld [vmem:[#allocation2 + $0x308] ss:$16 sps:$4 sm:$0xff]  }
  0xa3   :  { %1813 = vmatpush1.bf16.msra.mxu0 %v3238_v22  ;;  %v3330_v22 = vld [vmem:[#allocation2 + $0x4ec] ss:$16 sps:$4 sm:$0xff]  }
  0xa4   :  { %1854 = vmatpush1.bf16.msra.mxu1 %v3241_v23  ;;  %1814 = vmatprep.subr.bf16.mxu0 %v3246_v24  ;;  %v3333_v23 = vld [vmem:[#allocation2 + $0x6ec] ss:$16 sps:$4 sm:$0xff]   ;;  %v3328_v24 = vld [vmem:[#allocation2 + $0x4e8] ss:$16 sps:$4 sm:$0xff]  }
  0xa5   :  { %1855 = vmatprep.subr.bf16.mxu1 %v3249_v25  ;;  %v3331_v25 = vld [vmem:[#allocation2 + $0x6e8] ss:$16 sps:$4 sm:$0xff]  }
  0xa7   :  { %1815 = vmatpush1.bf16.msra.mxu0 %v3244_v26  ;;  %v3336_v26 = vld [vmem:[#allocation2 + $0x4cc] ss:$16 sps:$4 sm:$0xff]  }
  0xa8   :  { %1856 = vmatpush1.bf16.msra.mxu1 %v3247_v27  ;;  %1816 = vmatprep.subr.bf16.mxu0 %v3252_v28  ;;  %v3339_v27 = vld [vmem:[#allocation2 + $0x6cc] ss:$16 sps:$4 sm:$0xff]   ;;  %v3334_v28 = vld [vmem:[#allocation2 + $0x4c8] ss:$16 sps:$4 sm:$0xff]  }
  0xa9   :  { %1857 = vmatprep.subr.bf16.mxu1 %v3255_v29  ;;  %v3337_v29 = vld [vmem:[#allocation2 + $0x6c8] ss:$16 sps:$4 sm:$0xff]  }
  0xab   :  { %1817 = vmatpush1.bf16.msra.mxu0 %v3250_v30  ;;  %v3342_v30 = vld [vmem:[#allocation2 + $0x4ac] ss:$16 sps:$4 sm:$0xff]  }
  0xac   :  { %1858 = vmatpush1.bf16.msra.mxu1 %v3253_v31  ;;  %1818 = vmatprep.subr.bf16.mxu0 %v3258_v32  ;;  %v3345_v31 = vld [vmem:[#allocation2 + $0x6ac] ss:$16 sps:$4 sm:$0xff]   ;;  %v3340_v32 = vld [vmem:[#allocation2 + $0x4a8] ss:$16 sps:$4 sm:$0xff]  }
  0xad   :  { %1859 = vmatprep.subr.bf16.mxu1 %v3261_v33  ;;  %v3343_v33 = vld [vmem:[#allocation2 + $0x6a8] ss:$16 sps:$4 sm:$0xff]  }
  0xaf   :  { %1819 = vmatpush1.bf16.msra.mxu0 %v3256_v34  ;;  %v3348_v34 = vld [vmem:[#allocation2 + $0x48c] ss:$16 sps:$4 sm:$0xff]  }
  0xb0   :  { %1860 = vmatpush1.bf16.msra.mxu1 %v3259_v47  ;;  %1820 = vmatprep.subr.bf16.mxu0 %v3264_v51  ;;  %v3346_v47 = vld [vmem:[#allocation2 + $0x488] ss:$16 sps:$4 sm:$0xff]   ;;  %v3354_v51 = vld [vmem:[#allocation2 + $0x46c] ss:$16 sps:$4 sm:$0xff]  }
  0xb1   :  { %1861 = vmatprep.subr.bf16.mxu1 %v3267_v35  ;;  %v3357_v35 = vld [vmem:[#allocation2 + $0x66c] ss:$16 sps:$4 sm:$0xff]  }
  0xb3   :  { %1821 = vmatpush1.bf16.msra.mxu0 %v3262_v38  ;;  %v3352_v38 = vld [vmem:[#allocation2 + $0x468] ss:$16 sps:$4 sm:$0xff]  }
  0xb4   :  { %1862 = vmatpush1.bf16.msra.mxu1 %v3265_v39  ;;  %1822 = vmatprep.subr.bf16.mxu0 %v3270_v40  ;;  %v3355_v39 = vld [vmem:[#allocation2 + $0x668] ss:$16 sps:$4 sm:$0xff]   ;;  %v3360_v40 = vld [vmem:[#allocation2 + $0x44c] ss:$16 sps:$4 sm:$0xff]  }
  0xb5   :  { %1863 = vmatprep.subr.bf16.mxu1 %v3273_v41  ;;  %v3361_v41 = vld [vmem:[#allocation2 + $0x648] ss:$16 sps:$4 sm:$0xff]  }
  0xb7   :  { %1823 = vmatpush1.bf16.msra.mxu0 %v3268_v42  ;;  %v3366_v42 = vld [vmem:[#allocation2 + $0x42c] ss:$16 sps:$4 sm:$0xff]  }
  0xb8   :  { %1864 = vmatpush1.bf16.msra.mxu1 %v3271_v43  ;;  %1824 = vmatprep.subr.bf16.mxu0 %v3276_v44  ;;  %v3369_v43 = vld [vmem:[#allocation2 + $0x62c] ss:$16 sps:$4 sm:$0xff]   ;;  %v3364_v44 = vld [vmem:[#allocation2 + $0x428] ss:$16 sps:$4 sm:$0xff]  }
  0xb9   :  { %1865 = vmatprep.subr.bf16.mxu1 %v3279_v45  ;;  %v3367_v45 = vld [vmem:[#allocation2 + $0x628] ss:$16 sps:$4 sm:$0xff]  }
  0xbb   :  { %1825 = vmatpush1.bf16.msra.mxu0 %v3274_v46  ;;  %v3372_v46 = vld [vmem:[#allocation2 + $0x40c] ss:$16 sps:$4 sm:$0xff]  }
  0xbc   :  { %1866 = vmatpush1.bf16.msra.mxu1 %v3277_v48  ;;  %1826 = vmatprep.subr.bf16.mxu0 %v3282_v49  ;;  %v3375_v48 = vld [vmem:[#allocation2 + $0x60c] ss:$16 sps:$4 sm:$0xff]   ;;  %v3370_v49 = vld [vmem:[#allocation2 + $0x408] ss:$16 sps:$4 sm:$0xff]  }
  0xbd   :  { %1867 = vmatprep.subr.bf16.mxu1 %v3285_v50  ;;  %v3373_v50 = vld [vmem:[#allocation2 + $0x608] ss:$16 sps:$4 sm:$0xff]  }
  0xbf   :  { %1827 = vmatpush2.bf16.msra.mxu0 %v3280_v52  ;;  %v3378_v52 = vld [vmem:[#allocation2 + $0x5ec] ss:$16 sps:$4 sm:$0xff]  }
  0xc0   :  { %1868 = vmatpush2.bf16.msra.mxu1 %v3283_v53  ;;  %1828 = vmatprep.subr.bf16.mxu0 %v3288_v54  ;;  %v3381_v53 = vld [vmem:[#allocation2 + $0x7ec] ss:$16 sps:$4 sm:$0xff]   ;;  %v3376_v54 = vld [vmem:[#allocation2 + $0x5e8] ss:$16 sps:$4 sm:$0xff]  }
  0xc1   :  { %1869 = vmatprep.subr.bf16.mxu1 %v3291_v55  ;;  %v3379_v55 = vld [vmem:[#allocation2 + $0x7e8] ss:$16 sps:$4 sm:$0xff]  }
  0xc3   :  { %1829 = vmatpush2.bf16.msra.mxu0 %v3286_v56  ;;  %v3384_v56 = vld [vmem:[#allocation2 + $0x5cc] ss:$16 sps:$4 sm:$0xff]  }
  0xc4   :  { %1870 = vmatpush2.bf16.msra.mxu1 %v3289_v57  ;;  %1830 = vmatprep.subr.bf16.mxu0 %v3294_v58  ;;  %v3387_v57 = vld [vmem:[#allocation2 + $0x7cc] ss:$16 sps:$4 sm:$0xff]   ;;  %v3382_v58 = vld [vmem:[#allocation2 + $0x5c8] ss:$16 sps:$4 sm:$0xff]  }
  0xc5   :  { %1871 = vmatprep.subr.bf16.mxu1 %v3297_v59  ;;  %v3385_v59 = vld [vmem:[#allocation2 + $0x7c8] ss:$16 sps:$4 sm:$0xff]  }
  0xc7   :  { %1831 = vmatpush2.bf16.msra.mxu0 %v3292_v60  ;;  %v3390_v60 = vld [vmem:[#allocation2 + $0x5ac] ss:$16 sps:$4 sm:$0xff]  }
  0xc8   :  { %1872 = vmatpush2.bf16.msra.mxu1 %v3295_v61  ;;  %1832 = vmatprep.subr.bf16.mxu0 %v3300_v62  ;;  %v3393_v61 = vld [vmem:[#allocation2 + $0x7ac] ss:$16 sps:$4 sm:$0xff]   ;;  %v3388_v62 = vld [vmem:[#allocation2 + $0x5a8] ss:$16 sps:$4 sm:$0xff]  }
  0xc9   :  { %1873 = vmatprep.subr.bf16.mxu1 %v3303_v63  ;;  %v3391_v63 = vld [vmem:[#allocation2 + $0x7a8] ss:$16 sps:$4 sm:$0xff]  }
  0xcb   :  { %1833 = vmatpush2.bf16.msra.mxu0 %v3298_v0  ;;  %v3396_v0 = vld [vmem:[#allocation2 + $0x58c] ss:$16 sps:$4 sm:$0xff]  }
  0xcc   :  { %1874 = vmatpush2.bf16.msra.mxu1 %v3301_v1  ;;  %1834 = vmatprep.subr.bf16.mxu0 %v3306_v2  ;;  %v3399_v1 = vld [vmem:[#allocation2 + $0x78c] ss:$16 sps:$4 sm:$0xff]   ;;  %v3394_v2 = vld [vmem:[#allocation2 + $0x588] ss:$16 sps:$4 sm:$0xff]  }
  0xcd   :  { %1875 = vmatprep.subr.bf16.mxu1 %v3309_v3  ;;  %v3397_v3 = vld [vmem:[#allocation2 + $0x788] ss:$16 sps:$4 sm:$0xff]  }
  0xcf   :  { %1835 = vmatpush2.bf16.msra.mxu0 %v3304_v4  ;;  %v3402_v4 = vld [vmem:[#allocation2 + $0x56c] ss:$16 sps:$4 sm:$0xff]  }
  0xd0   :  { %1876 = vmatpush2.bf16.msra.mxu1 %v3307_v5  ;;  %1836 = vmatprep.subr.bf16.mxu0 %v3312_v8  ;;  %v3405_v5 = vld [vmem:[#allocation2 + $0x76c] ss:$16 sps:$4 sm:$0xff]   ;;  %v3400_v8 = vld [vmem:[#allocation2 + $0x568] ss:$16 sps:$4 sm:$0xff]  }
  0xd1   :  { %1877 = vmatprep.subr.bf16.mxu1 %v3315_v9  ;;  %v3403_v9 = vld [vmem:[#allocation2 + $0x768] ss:$16 sps:$4 sm:$0xff]  }
  0xd3   :  { %1837 = vmatpush2.bf16.msra.mxu0 %v3310_v10  ;;  %v3408_v10 = vld [vmem:[#allocation2 + $0x54c] ss:$16 sps:$4 sm:$0xff]  }
  0xd4   :  { %1878 = vmatpush2.bf16.msra.mxu1 %v3313_v11  ;;  %1838 = vmatprep.subr.bf16.mxu0 %v3318_v12  ;;  %v3411_v11 = vld [vmem:[#allocation2 + $0x74c] ss:$16 sps:$4 sm:$0xff]   ;;  %v3406_v12 = vld [vmem:[#allocation2 + $0x548] ss:$16 sps:$4 sm:$0xff]  }
  0xd5   :  { %1879 = vmatprep.subr.bf16.mxu1 %v3321_v13  ;;  %v3409_v13 = vld [vmem:[#allocation2 + $0x748] ss:$16 sps:$4 sm:$0xff]  }
  0xd7   :  { %1839 = vmatpush2.bf16.msra.mxu0 %v3316_v14  ;;  %v3414_v14 = vld [vmem:[#allocation2 + $0x52c] ss:$16 sps:$4 sm:$0xff]  }
  0xd8   :  { %1880 = vmatpush2.bf16.msra.mxu1 %v3319_v15  ;;  %1840 = vmatprep.subr.bf16.mxu0 %v3324_v18  ;;  %v3417_v15 = vld [vmem:[#allocation2 + $0x72c] ss:$16 sps:$4 sm:$0xff]   ;;  %v3412_v18 = vld [vmem:[#allocation2 + $0x528] ss:$16 sps:$4 sm:$0xff]  }
  0xd9   :  { %1881 = vmatprep.subr.bf16.mxu1 %v3327_v19  ;;  %v3415_v19 = vld [vmem:[#allocation2 + $0x728] ss:$16 sps:$4 sm:$0xff]  }
  0xdb   :  { %1841 = vmatpush2.bf16.msra.mxu0 %v3322_v20  ;;  %v3420_v20 = vld [vmem:[#allocation2 + $0x50c] ss:$16 sps:$4 sm:$0xff]  }
  0xdc   :  { %1882 = vmatpush2.bf16.msra.mxu1 %v3325_v21  ;;  %1892 = vmatprep.subr.bf16.mxu0 %v3330_v22  ;;  %v3423_v21 = vld [vmem:[#allocation2 + $0x70c] ss:$16 sps:$4 sm:$0xff]   ;;  %v3418_v22 = vld [vmem:[#allocation2 + $0x508] ss:$16 sps:$4 sm:$0xff]  }
  0xdd   :  { %1933 = vmatprep.subr.bf16.mxu1 %v3333_v23  ;;  %v3421_v23 = vld [vmem:[#allocation2 + $0x708] ss:$16 sps:$4 sm:$0xff]  }
  0xde   :  { %1843 = vmatmul.mubr.bf16.vlgmr.msra.gmra.mxu0 %v3667_v6  ;;  %v3351_v6 = vld [vmem:[#allocation2 + $0x68c] ss:$16 sps:$4 sm:$0xff]  }
  0xdf   :  { %1884 = vmatmul.mubr.bf16.vlgmr.msra.gmra.mxu1 %v3669_v7  ;;  %1893 = vmatpush1.bf16.msra.mxu0 %v3328_v24  ;;  %v3349_v7 = vld [vmem:[#allocation2 + $0x688] ss:$16 sps:$4 sm:$0xff]   ;;  %v3426_v24 = vld [vmem:[#allocation5 + $0x74] ss:$8 sps:$4 sm:$0xff]  }
  0xe0   :  { %1934 = vmatpush1.bf16.msra.mxu1 %v3331_v25  ;;  %1894 = vmatprep.subr.bf16.mxu0 %v3336_v26  ;;  %v3424_v25 = vld [vmem:[#allocation5 + $0x70] ss:$8 sps:$4 sm:$0xff]   ;;  %v3429_v26 = vld [vmem:[#allocation5 + $0x64] ss:$8 sps:$4 sm:$0xff]  }
  0xe1   :  { %1935 = vmatprep.subr.bf16.mxu1 %v3339_v27  ;;  %1924 = vmatprep.mubr.bf16.mxu0 %v3685_v36  ;;  %v3363_v36 = vld [vmem:[#allocation2 + $0x64c] ss:$16 sps:$4 sm:$0xff]  }
  0xe2   :  { %1965 = vmatprep.mubr.bf16.mxu1 %v3689_v37  ;;  %v3358_v37 = vld [vmem:[#allocation2 + $0x448] ss:$16 sps:$4 sm:$0xff]  }
  0xe3   :  { %1895 = vmatpush1.bf16.msra.mxu0 %v3334_v28 }
  0xe4   :  { %1936 = vmatpush1.bf16.msra.mxu1 %v3337_v29  ;;  %1896 = vmatprep.subr.bf16.mxu0 %v3342_v30  ;;  %v3427_v29 = vld [vmem:[#allocation5 + $0x60] ss:$8 sps:$4 sm:$0xff]  }
  0xe5   :  { %1937 = vmatprep.subr.bf16.mxu1 %v3345_v31 }
  0xe7   :  { %1897 = vmatpush1.bf16.msra.mxu0 %v3340_v32  ;;  %v3432_v32 = vld [vmem:[#allocation5 + $0x54] ss:$8 sps:$4 sm:$0xff]  }
  0xe8   :  { %1938 = vmatpush1.bf16.msra.mxu1 %v3343_v33  ;;  %1898 = vmatprep.subr.bf16.mxu0 %v3348_v34 }
  0xe9   :  { %1939 = vmatprep.subr.bf16.mxu1 %v3351_v6  ;;  %v3430_v6 = vld [vmem:[#allocation5 + $0x50] ss:$8 sps:$4 sm:$0xff]  }
  0xeb   :  { %1899 = vmatpush1.bf16.msra.mxu0 %v3346_v47 }
  0xec   :  { %1940 = vmatpush1.bf16.msra.mxu1 %v3349_v7  ;;  %1900 = vmatprep.subr.bf16.mxu0 %v3354_v51  ;;  %v3435_v51 = vld [vmem:[#allocation5 + $0x44] ss:$8 sps:$4 sm:$0xff]  }
  0xed   :  { %1941 = vmatprep.subr.bf16.mxu1 %v3357_v35  ;;  %v3472_v35 = vld [vmem:[#allocation5 + $0x170] ss:$8 sps:$4 sm:$0xff]  }
  0xef   :  { %1901 = vmatpush1.bf16.msra.mxu0 %v3352_v38  ;;  %v3477_v38 = vld [vmem:[#allocation5 + $0x164] ss:$8 sps:$4 sm:$0xff]  }
  0xf0   :  { %1942 = vmatpush1.bf16.msra.mxu1 %v3355_v39  ;;  %1902 = vmatprep.subr.bf16.mxu0 %v3360_v40  ;;  %v3475_v39 = vld [vmem:[#allocation5 + $0x160] ss:$8 sps:$4 sm:$0xff]   ;;  %v3438_v40 = vld [vmem:[#allocation5 + $0x34] ss:$8 sps:$4 sm:$0xff]  }
  0xf1   :  { %1943 = vmatprep.subr.bf16.mxu1 %v3363_v36  ;;  %v3480_v36 = vld [vmem:[#allocation5 + $0x154] ss:$8 sps:$4 sm:$0xff]  }
  0xf3   :  { %1903 = vmatpush1.bf16.msra.mxu0 %v3358_v37  ;;  %v3436_v37 = vld [vmem:[#allocation5 + $0x30] ss:$8 sps:$4 sm:$0xff]  }
  0xf4   :  { %1944 = vmatpush1.bf16.msra.mxu1 %v3361_v41  ;;  %1904 = vmatprep.subr.bf16.mxu0 %v3366_v42  ;;  %v3478_v41 = vld [vmem:[#allocation5 + $0x150] ss:$8 sps:$4 sm:$0xff]   ;;  %v3441_v42 = vld [vmem:[#allocation5 + $0x24] ss:$8 sps:$4 sm:$0xff]  }
  0xf5   :  { %1945 = vmatprep.subr.bf16.mxu1 %v3369_v43  ;;  %v3483_v43 = vld [vmem:[#allocation5 + $0x144] ss:$8 sps:$4 sm:$0xff]  }
  0xf7   :  { %1905 = vmatpush1.bf16.msra.mxu0 %v3364_v44  ;;  %v3439_v44 = vld [vmem:[#allocation5 + $0x20] ss:$8 sps:$4 sm:$0xff]  }
  0xf8   :  { %1946 = vmatpush1.bf16.msra.mxu1 %v3367_v45  ;;  %1906 = vmatprep.subr.bf16.mxu0 %v3372_v46  ;;  %v3481_v45 = vld [vmem:[#allocation5 + $0x140] ss:$8 sps:$4 sm:$0xff]   ;;  %v3444_v46 = vld [vmem:[#allocation5 + $0x14] ss:$8 sps:$4 sm:$0xff]  }
  0xf9   :  { %1947 = vmatprep.subr.bf16.mxu1 %v3375_v48  ;;  %v3486_v48 = vld [vmem:[#allocation5 + $0x134] ss:$8 sps:$4 sm:$0xff]  }
  0xfb   :  { %1907 = vmatpush1.bf16.msra.mxu0 %v3370_v49  ;;  %v3442_v49 = vld [vmem:[#allocation5 + $0x10] ss:$8 sps:$4 sm:$0xff]  }
  0xfc   :  { %1948 = vmatpush1.bf16.msra.mxu1 %v3373_v50  ;;  %1908 = vmatprep.subr.bf16.mxu0 %v3378_v52  ;;  %v3484_v50 = vld [vmem:[#allocation5 + $0x130] ss:$8 sps:$4 sm:$0xff]   ;;  %v3447_v52 = vld [vmem:[#allocation5 + $0x4] ss:$8 sps:$4 sm:$0xff]  }
  0xfd   :  { %1949 = vmatprep.subr.bf16.mxu1 %v3381_v53  ;;  %v3489_v53 = vld [vmem:[#allocation5 + $0x124] ss:$8 sps:$4 sm:$0xff]  }
  0xff   :  { %1909 = vmatpush2.bf16.msra.mxu0 %v3376_v54  ;;  %v3445_v54 = vld [vmem:[#allocation5] ss:$8 sps:$4 sm:$0xff]  }
 0x100   :  { %1950 = vmatpush2.bf16.msra.mxu1 %v3379_v55  ;;  %1910 = vmatprep.subr.bf16.mxu0 %v3384_v56  ;;  %v3487_v55 = vld [vmem:[#allocation5 + $0x120] ss:$8 sps:$4 sm:$0xff]   ;;  %v3450_v56 = vld [vmem:[#allocation5 + $0xf4] ss:$8 sps:$4 sm:$0xff]  }
 0x101   :  { %1951 = vmatprep.subr.bf16.mxu1 %v3387_v57  ;;  %v3492_v57 = vld [vmem:[#allocation5 + $0x114] ss:$8 sps:$4 sm:$0xff]  }
 0x103   :  { %1911 = vmatpush2.bf16.msra.mxu0 %v3382_v58  ;;  %v3448_v58 = vld [vmem:[#allocation5 + $0xf0] ss:$8 sps:$4 sm:$0xff]  }
 0x104   :  { %1952 = vmatpush2.bf16.msra.mxu1 %v3385_v59  ;;  %1912 = vmatprep.subr.bf16.mxu0 %v3390_v60  ;;  %v3490_v59 = vld [vmem:[#allocation5 + $0x110] ss:$8 sps:$4 sm:$0xff]   ;;  %v3453_v60 = vld [vmem:[#allocation5 + $0xe4] ss:$8 sps:$4 sm:$0xff]  }
 0x105   :  { %1953 = vmatprep.subr.bf16.mxu1 %v3393_v61  ;;  %v3495_v61 = vld [vmem:[#allocation5 + $0x104] ss:$8 sps:$4 sm:$0xff]  }
 0x107   :  { %1913 = vmatpush2.bf16.msra.mxu0 %v3388_v62  ;;  %v3451_v62 = vld [vmem:[#allocation5 + $0xe0] ss:$8 sps:$4 sm:$0xff]  }
 0x108   :  { %1954 = vmatpush2.bf16.msra.mxu1 %v3391_v63  ;;  %1914 = vmatprep.subr.bf16.mxu0 %v3396_v0  ;;  %v3493_v63 = vld [vmem:[#allocation5 + $0x100] ss:$8 sps:$4 sm:$0xff]   ;;  %v3456_v0 = vld [vmem:[#allocation5 + $0xd4] ss:$8 sps:$4 sm:$0xff]  }
 0x109   :  { %1955 = vmatprep.subr.bf16.mxu1 %v3399_v1  ;;  %v3498_v1 = vld [vmem:[#allocation5 + $0x1f4] ss:$8 sps:$4 sm:$0xff]  }
 0x10b   :  { %1915 = vmatpush2.bf16.msra.mxu0 %v3394_v2  ;;  %v3454_v2 = vld [vmem:[#allocation5 + $0xd0] ss:$8 sps:$4 sm:$0xff]  }
 0x10c   :  { %1956 = vmatpush2.bf16.msra.mxu1 %v3397_v3  ;;  %1916 = vmatprep.subr.bf16.mxu0 %v3402_v4  ;;  %v3496_v3 = vld [vmem:[#allocation5 + $0x1f0] ss:$8 sps:$4 sm:$0xff]   ;;  %v3459_v4 = vld [vmem:[#allocation5 + $0xc4] ss:$8 sps:$4 sm:$0xff]  }
 0x10d   :  { %1957 = vmatprep.subr.bf16.mxu1 %v3405_v5  ;;  %v3501_v5 = vld [vmem:[#allocation5 + $0x1e4] ss:$8 sps:$4 sm:$0xff]  }
 0x10f   :  { %1917 = vmatpush2.bf16.msra.mxu0 %v3400_v8  ;;  %v3457_v8 = vld [vmem:[#allocation5 + $0xc0] ss:$8 sps:$4 sm:$0xff]  }
 0x110   :  { %1958 = vmatpush2.bf16.msra.mxu1 %v3403_v9  ;;  %1918 = vmatprep.subr.bf16.mxu0 %v3408_v10  ;;  %v3499_v9 = vld [vmem:[#allocation5 + $0x1e0] ss:$8 sps:$4 sm:$0xff]   ;;  %v3462_v10 = vld [vmem:[#allocation5 + $0xb4] ss:$8 sps:$4 sm:$0xff]  }
 0x111   :  { %1959 = vmatprep.subr.bf16.mxu1 %v3411_v11  ;;  %v3504_v11 = vld [vmem:[#allocation5 + $0x1d4] ss:$8 sps:$4 sm:$0xff]  }
 0x113   :  { %1919 = vmatpush2.bf16.msra.mxu0 %v3406_v12  ;;  %v318_v12 = vlaneseq }
 0x114   :  { %1960 = vmatpush2.bf16.msra.mxu1 %v3409_v13  ;;  %1920 = vmatprep.subr.bf16.mxu0 %v3414_v14  ;;  %v3460_v13 = vld [vmem:[#allocation5 + $0xb0] ss:$8 sps:$4 sm:$0xff]  }
 0x115   :  { %1961 = vmatprep.subr.bf16.mxu1 %v3417_v15  ;;  %v3502_v14 = vld [vmem:[#allocation5 + $0x1d0] ss:$8 sps:$4 sm:$0xff]   ;;  %v3465_v15 = vld [vmem:[#allocation5 + $0xa4] ss:$8 sps:$4 sm:$0xff]  }
 0x117   :  { %1921 = vmatpush2.bf16.msra.mxu0 %v3412_v18  ;;  %v3507_v18 = vld [vmem:[#allocation5 + $0x1c4] ss:$8 sps:$4 sm:$0xff]  }
 0x118   :  { %1962 = vmatpush2.bf16.msra.mxu1 %v3415_v19  ;;  %1922 = vmatprep.subr.bf16.mxu0 %v3420_v20  ;;  %v3719_v19 = vshrl.u32 %v318_v12, 7  ;;  %v3463_v20 = vld [vmem:[#allocation5 + $0xa0] ss:$8 sps:$4 sm:$0xff]   ;;  %v3531_v12 = vld [vmem:[%s3808_s5 + $0x10] sm:$0xff]  }
 0x119   :  { %1963 = vmatprep.subr.bf16.mxu1 %v3423_v21  ;;  %v3505_v21 = vld [vmem:[#allocation5 + $0x1c0] ss:$8 sps:$4 sm:$0xff]  }
 0x11b   :  { %1923 = vmatpush2.bf16.msra.mxu0 %v3418_v22  ;;  %v3468_v22 = vld [vmem:[#allocation5 + $0x94] ss:$8 sps:$4 sm:$0xff]  }
 0x11c   :  { %1964 = vmatpush2.bf16.msra.mxu1 %v3421_v23  ;;  %2378 = vmatprep.subr.bf16.mxu0 %v3426_v24  ;;  %v3510_v23 = vld [vmem:[#allocation5 + $0x1b4] ss:$8 sps:$4 sm:$0xff]   ;;  %v320_v24 = vsub.s32 0, %v3719_v19 }
 0x11e   :  { %v3709_v27 = vpop.f32.mrf.mxu0  ;;  %1925 = vmatmul.mubr.bf16.vlgmr.msra.gmra.mxu0 %v3695_v16  ;;  %v3474_v16 = vld [vmem:[#allocation5 + $0x174] ss:$8 sps:$4 sm:$0xff]  }
 0x11f   :  { %v3711_v28 = vpop.f32.mrf.mxu1  ;;  %1966 = vmatmul.mubr.bf16.vlgmr.msra.gmra.mxu1 %v3699_v17  ;;  %2379 = vmatpush1.bf16.msra.mxu0 %v3424_v25  ;;  %v3433_v17 = vld [vmem:[#allocation5 + $0x40] ss:$8 sps:$4 sm:$0xff]  }
 0x120   :  { %v3715_v30 = vpop.f32.mrf.mxu0  ;;  %2380 = vmatprep.subr.bf16.mxu0 %v3429_v26  ;;  %2419 = vmatprep.subr.bf16.mxu1 %v3474_v16  ;;  %v3725_v25 = vld [vmem:[%s3805_s2] sm:$0xf]  ;;  %v324_v26 = vsub.s32 1, %v3719_v19 }
 0x121   :  { %v3717_v31 = vpop.f32.mrf.mxu1  ;;  %2420 = vmatpush1.bf16.msra.mxu1 %v3472_v35  ;;  %v3513_v35 = vld [vmem:[#allocation5 + $0x1a4] ss:$8 sps:$4 sm:$0xff]  }
 0x122   :  { %v1684_v33 = vpop.f32.mrf.mxu0  ;;  %2421 = vmatprep.subr.bf16.mxu1 %v3477_v38  ;;  %v3511_v38 = vld [vmem:[#allocation5 + $0x1a0] ss:$8 sps:$4 sm:$0xff]  }
 0x123   :  { %v1725_v34 = vpop.f32.mrf.mxu1  ;;  %2381 = vmatpush1.bf16.msra.mxu0 %v3427_v29  ;;  %v3466_v29 = vld [vmem:[#allocation5 + $0x90] ss:$8 sps:$4 sm:$0xff]   ;;  %v3471_v33 = vld [vmem:[#allocation5 + $0x84] ss:$8 sps:$4 sm:$0xff]  }
 0x124   :  { %v1685_v47 = vpop.f32.mrf.mxu0  ;;  %2382 = vmatprep.subr.bf16.mxu0 %v3432_v32  ;;  %v3508_v32 = vld [vmem:[#allocation5 + $0x1b0] ss:$8 sps:$4 sm:$0xff]   ;;  %v321_v34 = vrot.slane %v3725_v25, %v320_v24 }
 0x125   :  { %v1726_v7 = vpop.f32.mrf.mxu1  ;;  %2422 = vmatpush1.bf16.msra.mxu1 %v3475_v39  ;;  %v3469_v47 = vld [vmem:[#allocation5 + $0x80] ss:$8 sps:$4 sm:$0xff]  }
 0x126   :  { %2423 = vmatprep.subr.bf16.mxu1 %v3480_v36  ;;  %v1681_v7 = vadd.f32 %v3709_v27, %v321_v34  ;;  %v3514_v27 = vld [vmem:[#allocation5 + $0x190] ss:$8 sps:$4 sm:$0xff]  }
 0x127   :  { %2383 = vmatpush1.bf16.msra.mxu0 %v3430_v6  ;;  %v325_v6 = vrot.slane %v3725_v25, %v324_v26 }
 0x128   :  { %2384 = vmatprep.subr.bf16.mxu0 %v3435_v51  ;;  %v1722_v16 = vadd.f32 %v3711_v28, %v1681_v7 }
 0x129   :  { %2424 = vmatpush1.bf16.msra.mxu1 %v3478_v41  ;;  %v1683_v51 = vadd.f32 %v3715_v30, %v325_v6 }
 0x12a   :  { %2425 = vmatprep.subr.bf16.mxu1 %v3483_v43 }
 0x12b   :  { %2385 = vmatpush1.bf16.msra.mxu0 %v3433_v17 }
 0x12c   :  { %2386 = vmatprep.subr.bf16.mxu0 %v3438_v40  ;;  %v1724_v40 = vadd.f32 %v3717_v31, %v1683_v51 }
 0x12d   :  { %2426 = vmatpush1.bf16.msra.mxu1 %v3481_v45 }
 0x12e   :  { %2427 = vmatprep.subr.bf16.mxu1 %v3486_v48 }
 0x12f   :  { %2387 = vmatpush1.bf16.msra.mxu0 %v3436_v37 }
 0x130   :  { %2388 = vmatprep.subr.bf16.mxu0 %v3441_v42  ;;  %v3516_v42 = vld [vmem:[#allocation5 + $0x194] ss:$8 sps:$4 sm:$0xff]  }
 0x131   :  { %2428 = vmatpush1.bf16.msra.mxu1 %v3484_v50  ;;  %v3519_v50 = vld [vmem:[#allocation5 + $0x184] ss:$8 sps:$4 sm:$0xff]  }
 0x132   :  { %2429 = vmatprep.subr.bf16.mxu1 %v3489_v53  ;;  %v3517_v53 = vld [vmem:[#allocation5 + $0x180] ss:$8 sps:$4 sm:$0xff]  }
 0x133   :  { %2389 = vmatpush1.bf16.msra.mxu0 %v3439_v44 }
 0x134   :  { %2390 = vmatprep.subr.bf16.mxu0 %v3444_v46 }
 0x135   :  { %2430 = vmatpush1.bf16.msra.mxu1 %v3487_v55 }
 0x136   :  { %2431 = vmatprep.subr.bf16.mxu1 %v3492_v57 }
 0x137   :  { %2391 = vmatpush1.bf16.msra.mxu0 %v3442_v49 }
 0x138   :  { %2392 = vmatprep.subr.bf16.mxu0 %v3447_v52 }
 0x139   :  { %2432 = vmatpush1.bf16.msra.mxu1 %v3490_v59 }
 0x13a   :  { %2433 = vmatprep.subr.bf16.mxu1 %v3495_v61 }
 0x13b   :  { %2393 = vmatpush1.bf16.msra.mxu0 %v3445_v54 }
 0x13c   :  { %2394 = vmatprep.subr.bf16.mxu0 %v3450_v56 }
 0x13d   :  { %2434 = vmatpush1.bf16.msra.mxu1 %v3493_v63  ;;  %v3520_v63 = vld [vmem:[%s3808_s5 + $0x78] sm:$0xff]  }
 0x13e   :  { %2435 = vmatprep.subr.bf16.mxu1 %v3498_v1  ;;  %v3522_v1 = vld [vmem:[%s3808_s5 + $0x70] sm:$0xff]  }
 0x13f   :  { %2395 = vmatpush2.bf16.msra.mxu0 %v3448_v58 }
 0x140   :  { %2396 = vmatprep.subr.bf16.mxu0 %v3453_v60 }
 0x141   :  { %2436 = vmatpush2.bf16.msra.mxu1 %v3496_v3  ;;  %v3524_v3 = vld [vmem:[%s3808_s5 + $0x68] sm:$0xff]  }
 0x142   :  { %2437 = vmatprep.subr.bf16.mxu1 %v3501_v5  ;;  %v3526_v5 = vld [vmem:[%s3808_s5 + $0x60] sm:$0xff]  }
 0x143   :  { %2397 = vmatpush2.bf16.msra.mxu0 %v3451_v62 }
 0x144   :  { %2398 = vmatprep.subr.bf16.mxu0 %v3456_v0  ;;  %v3521_v0 = vld [vmem:[%s3808_s5 + $0x38] sm:$0xff]  }
 0x145   :  { %2438 = vmatpush2.bf16.msra.mxu1 %v3499_v9  ;;  %v3528_v9 = vld [vmem:[%s3808_s5 + $0x58] sm:$0xff]  }
 0x146   :  { %2439 = vmatprep.subr.bf16.mxu1 %v3504_v11  ;;  %v3530_v11 = vld [vmem:[%s3808_s5 + $0x50] sm:$0xff]  }
 0x147   :  { %2399 = vmatpush2.bf16.msra.mxu0 %v3454_v2  ;;  %v3523_v2 = vld [vmem:[%s3808_s5 + $0x30] sm:$0xff]  }
 0x148   :  { %2400 = vmatprep.subr.bf16.mxu0 %v3459_v4  ;;  %v3525_v4 = vld [vmem:[%s3808_s5 + $0x28] sm:$0xff]  }
 0x149   :  { %2440 = vmatpush2.bf16.msra.mxu1 %v3502_v14  ;;  %v332_v14 = vsub.s32 3, %v3719_v19 }
 0x14a   :  { %2441 = vmatprep.subr.bf16.mxu1 %v3507_v18 }
 0x14b   :  { %2401 = vmatpush2.bf16.msra.mxu0 %v3457_v8  ;;  %v3527_v8 = vld [vmem:[%s3808_s5 + $0x20] sm:$0xff]   ;;  %v333_v18 = vrot.slane %v3725_v25, %v332_v14 }
 0x14c   :  { %2402 = vmatprep.subr.bf16.mxu0 %v3462_v10  ;;  %v3529_v10 = vld [vmem:[%s3808_s5 + $0x18] sm:$0xff]  }
 0x14d   :  { %2442 = vmatpush2.bf16.msra.mxu1 %v3505_v21 }
 0x14e   :  { %2443 = vmatprep.subr.bf16.mxu1 %v3510_v23 }
 0x14f   :  { %2403 = vmatpush2.bf16.msra.mxu0 %v3460_v13  ;;  %v328_v13 = vsub.s32 2, %v3719_v19  ;;  %v2986_v19 = vld [vmem:[%s3809_s6] ss:$0 sm:$0xff] }
 0x150   :  { %2404 = vmatprep.subr.bf16.mxu0 %v3465_v15 }
 0x151   :  { %2444 = vmatpush2.bf16.msra.mxu1 %v3508_v32  ;;  %v329_v15 = vrot.slane %v3725_v25, %v328_v13 }
 0x152   :  { %2445 = vmatprep.subr.bf16.mxu1 %v3513_v35 }
 0x153   :  { %2405 = vmatpush2.bf16.msra.mxu0 %v3463_v20 }
 0x154   :  { %2406 = vmatprep.subr.bf16.mxu0 %v3468_v22 }
 0x155   :  { %2446 = vmatpush2.bf16.msra.mxu1 %v3511_v38 }
 0x156   :  { %2447 = vmatprep.subr.bf16.mxu1 %v3516_v42  ;;  %v3533_v42 = vld [vmem:[%s3808_s5 + $0x8] sm:$0xff]  }
 0x157   :  { %2407 = vmatpush2.bf16.msra.mxu0 %v3466_v29 }
 0x158   :  { %2408 = vmatprep.subr.bf16.mxu0 %v3471_v33 }
 0x159   :  { %2448 = vmatpush2.bf16.msra.mxu1 %v3514_v27  ;;  %v3534_v27 = vld [vmem:[%s3808_s5 + $0x40] sm:$0xff]  }
 0x15a   :  { %2449 = vmatprep.subr.bf16.mxu1 %v3519_v50 }
 0x15b   :  { %2409 = vmatpush2.bf16.msra.mxu0 %v3469_v47 }
 0x15c   :  { %3003 = vmatprep.subr.bf16.mxu0 %v3520_v63 }
 0x15d   :  { %2450 = vmatpush2.bf16.msra.mxu1 %v3517_v53 }
 0x15e   :  { %v1762_v17 = vpop.f32.mrf.mxu0 }
 0x15f   :  { %v1803_v39 = vpop.f32.mrf.mxu1  ;;  %v1763_v36 = vadd.f32 %v1762_v17, %v1722_v16 }
 0x160   :  { %v1764_v37 = vpop.f32.mrf.mxu0 }
 0x161   :  { %v1805_v41 = vpop.f32.mrf.mxu1  ;;  %v1804_v43 = vadd.f32 %v1803_v39, %v1763_v36  ;;  %v1765_v44 = vadd.f32 %v1764_v37, %v1724_v40 }
 0x162   :  { %v1766_v45 = vpop.f32.mrf.mxu0 }
 0x163   :  { %v1807_v30 = vpop.f32.mrf.mxu1  ;;  %v1806_v46 = vadd.f32 %v1805_v41, %v1765_v44  ;;  %v1974_v28 = vmax.f32 %v1804_v43, 0.0  ;;  %v3532_v41 = vld [vmem:[%s3808_s5 + $0x48] sm:$0xff]   ;;  %v3535_v45 = vld [vmem:[%s3808_s5] sm:$0xff]  }
 0x164   :  { %v1767_v48 = vpop.f32.mrf.mxu0 }
 0x165   :  { %v1808_v49 = vpop.f32.mrf.mxu1  ;;  %v1975_v52 = vmax.f32 %v1806_v46, 0.0  ;;  %v1978_v54 = vpack.c.bf16 %v1974_v28, %v1974_v28  ;;  %v2046_v46 = vld [vmem:[%s3807_s4] sm:$0x3] }
 0x166   :  { %v2051_v28 = vrot.slane %v2046_v46, %v320_v24  ;;  %v2055_v48 = vrot.slane %v2046_v46, %v324_v26 }
 0x167   :  { %v1979_v31 = vpack.c.bf16 %v1975_v52, %v1975_v52 }
 0x169   :  { %2410 = vmatprep.mubr.bf16.mxu0 %v1979_v31 }
 0x16a   :  { %2411 = vmatmul.mubr.bf16.vlgmr.msra.gmra.mxu0 %v1978_v54 }
 0x16b   :  { %3004 = vmatpush3.bf16.msra.mxu0 %v3521_v0 }
 0x16c   :  { %3005 = vmatprep.subr.bf16.mxu0 %v3522_v1 }
 0x16f   :  { %3006 = vmatpush3.bf16.msra.mxu0 %v3523_v2 }
 0x170   :  { %3007 = vmatprep.subr.bf16.mxu0 %v3524_v3 }
 0x173   :  { %3008 = vmatpush3.bf16.msra.mxu0 %v3525_v4 }
 0x174   :  { %3009 = vmatprep.subr.bf16.mxu0 %v3526_v5 }
 0x177   :  { %3010 = vmatpush3.bf16.msra.mxu0 %v3527_v8 }
 0x178   :  { %3011 = vmatprep.subr.bf16.mxu0 %v3528_v9 }
 0x17b   :  { %3012 = vmatpush3.bf16.msra.mxu0 %v3529_v10 }
 0x17c   :  { %3013 = vmatprep.subr.bf16.mxu0 %v3530_v11 }
 0x17f   :  { %3014 = vmatpush3.bf16.msra.mxu0 %v3531_v12 }
 0x180   :  { %3015 = vmatprep.subr.bf16.mxu0 %v3532_v41 }
 0x183   :  { %3016 = vmatpush3.bf16.msra.mxu0 %v3533_v42 }
 0x184   :  { %3017 = vmatprep.subr.bf16.mxu0 %v3534_v27 }
 0x187   :  { %3018 = vmatpush3.bf16.msra.mxu0 %v3535_v45 }
 0x19e   :  { %v1844_v55 = vpop.f32.mrf.mxu0 }
 0x19f   :  { %v1885_v56 = vpop.f32.mrf.mxu1  ;;  %v1845_v20 = vadd.f32 %v1844_v55, %v329_v15 }
 0x1a0   :  { %v1846_v57 = vpop.f32.mrf.mxu0 }
 0x1a1   :  { %v1887_v58 = vpop.f32.mrf.mxu1  ;;  %v1847_v21 = vadd.f32 %v1846_v57, %v333_v18  ;;  %v1886_v22 = vadd.f32 %v1885_v56, %v1845_v20 }
 0x1a2   :  { %v1848_v59 = vpop.f32.mrf.mxu0 }
 0x1a3   :  { %v1889_v60 = vpop.f32.mrf.mxu1  ;;  %v1888_v32 = vadd.f32 %v1887_v58, %v1847_v21 }
 0x1a4   :  { %v1849_v61 = vpop.f32.mrf.mxu0 }
 0x1a5   :  { %v1890_v62 = vpop.f32.mrf.mxu1 }
 0x1de   :  { %v1926_v23 = vpop.f32.mrf.mxu0 }
 0x1df   :  { %v1967_v29 = vpop.f32.mrf.mxu1  ;;  %v1927_v33 = vadd.f32 %v1926_v23, %v1886_v22 }
 0x1e0   :  { %v1928_v34 = vpop.f32.mrf.mxu0 }
 0x1e1   :  { %v1969_v6 = vpop.f32.mrf.mxu1  ;;  %v1968_v47 = vadd.f32 %v1967_v29, %v1927_v33  ;;  %v1929_v7 = vadd.f32 %v1928_v34, %v1888_v32 }
 0x1e2   :  { %v1930_v51 = vpop.f32.mrf.mxu0 }
 0x1e3   :  { %v1971_v35 = vpop.f32.mrf.mxu1  ;;  %v1970_v16 = vadd.f32 %v1969_v6, %v1929_v7  ;;  %v1976_v38 = vmax.f32 %v1968_v47, 0.0 }
 0x1e4   :  { %v1931_v17 = vpop.f32.mrf.mxu0 }
 0x1e5   :  { %v1972_v39 = vpop.f32.mrf.mxu1  ;;  %v1977_v40 = vmax.f32 %v1970_v16, 0.0  ;;  %v1980_v25 = vpack.c.bf16 %v1976_v38, %v1976_v38 }
 0x1e7   :  { %v1981_v36 = vpack.c.bf16 %v1977_v40, %v1977_v40 }
 0x1e9   :  { %2451 = vmatprep.mubr.bf16.mxu1 %v1981_v36 }
 0x1ea   :  { %2452 = vmatmul.mubr.bf16.vlgmr.msra.gmra.mxu1 %v1980_v25 }
 0x22a   :  { %v2412_v37 = vpop.f32.mrf.mxu0 }
 0x22b   :  { %v2413_v49 = vadd.f32 %v2412_v37, %v2051_v28 }
 0x22c   :  { %v2414_v43 = vpop.f32.mrf.mxu0 }
 0x22d   :  { %v2415_v52 = vadd.f32 %v2414_v43, %v2055_v48 }
 0x22e   :  { %v2416_v44 = vpop.f32.mrf.mxu0 }
 0x230   :  { %v2417_v30 = vpop.f32.mrf.mxu0 }
 0x2aa   :  { %v2453_v50 = vpop.f32.mrf.mxu1 }
 0x2ab   :  { %v2454_v53 = vadd.f32 %v2453_v50, %v2413_v49 }
 0x2ac   :  { %v2455_v31 = vpop.f32.mrf.mxu1 }
 0x2ad   :  { %v2456_v54 = vadd.f32 %v2455_v31, %v2415_v52  ;;  %v2460_v55 = vmax.f32 %v2454_v53, 0.0 }
 0x2ae   :  { %v2457_v56 = vpop.f32.mrf.mxu1 }
 0x2af   :  { %v2461_v57 = vmax.f32 %v2456_v54, 0.0  ;;  %v2462_v60 = vpack.c.bf16 %v2460_v55, %v2460_v55 }
 0x2b0   :  { %v2458_v58 = vpop.f32.mrf.mxu1 }
 0x2b1   :  { %v2463_v59 = vpack.c.bf16 %v2461_v57, %v2461_v57 }
 0x2b3   :  { %2631 = vmatprep.mubr.bf16.mxu0 %v2463_v59 }
 0x2b4   :  { %2632 = vmatmul.mubr.bf16.vlgmr.msra.gmra.mxu0 %v2462_v60 }
 0x374   :  { %v3019_v61 = vpop.f32.mrf.mxu0 }
 0x376   :  { %v3020_v24 = vpop.f32.mrf.mxu0 }
 0x377   :  { %v3021_v26 = vadd.f32 %v3020_v24, %v3019_v61 }
 0x378   :  { %v3022_v62 = vpop.f32.mrf.mxu0 }
 0x379   :  { %v2634_v63 = vadd.f32 %v3021_v26, %v2986_v19 }
 0x37a   :  { %v3023_v0 = vpop.f32.mrf.mxu0 }
 0x37b   :  { %v2639_v1 = vmax.f32 %v2634_v63, 0.0 }
 0x37d   :  { %2641 = vst.msk [vmem:[#allocation7] sm:$0xff] %vm2640_vm0, %v2639_v1 }
 0x37e   :  { %3587 = shalt.err (!%p3584_p0)
}
 0x37f   :  { %2651 = dma.vmem_to_hbm [thread:$0]  %s2649_s29, 128, %s3810_s7, [#allocation4]  }
 0x380   :  { %3600 = dma.done.wait [#allocation4], 128  }
 0x381   :  { %3601 = vsyncadd [#allocation4], 4294967168 }
 0x382   :  { %2655 = vsyncpa [#allocation3], 1 }
 0x383   :  { %2656 = vsyncpa [#allocation6], 1 }
 0x384   :  { %2657 = vsyncpa [#allocation4], 1 }

</bundles_post_ra>
